<compile_context>
chip_gen: v7x
topology: tpu7x:2x2x1
jax: 0.10.0
libtpu: 0.0.40
codegen_flags: <defaults>
</compile_context>

<pallas_src>
import functools

import jax
import jax.numpy as jnp
from jax import lax
from jax.experimental import pallas as pl
from jax.experimental.pallas import tpu as pltpu


# ---------------------------------------------------------------------------
# Stage 1: fused 1x1 Q/K projection (computed once, not once per query tile)
# ---------------------------------------------------------------------------
def _qk_project_kernel(x_ref, w_ref, b_ref, q_ref, k_ref, *, c8):
    # x_ref: (1, TS, C)   flattened-NHWC input rows for this tile
    # w_ref: (C, 2*C8)    [Wq | Wk] fused 1x1 conv weights (channels-last)
    # b_ref: (1, 2*C8)    [bq | bk]
    # q_ref: (1, TS, C8)  query projection output
    # k_ref: (1, TS, C8)  key projection output
    qk = jnp.dot(x_ref[0], w_ref[...],
                 preferred_element_type=jnp.float32) + b_ref[...]   # (TS, 2*C8)
    q_ref[0] = qk[:, :c8].astype(q_ref.dtype)
    k_ref[0] = qk[:, c8:].astype(k_ref.dtype)


# ---------------------------------------------------------------------------
# Stage 2: Q K^T + row softmax on a (TQ, HW) tile
# ---------------------------------------------------------------------------
def _sae_attention_kernel(q_ref, k_ref, out_ref, *, hw_valid):
    # q_ref:   (1, TQ, C8)      query rows for this tile
    # k_ref:   (1, HW_pad, C8)  full key slab (resident across the qi axis)
    # out_ref: (1, TQ, HW_pad)  attention rows (lane-dense HW output)
    q = q_ref[0]
    k = k_ref[0]

    # energy[i, j] = sum_c Q[i, c] * K[j, c]  (contract C8, single MXU call).
    energy = lax.dot_general(q, k, (((1,), (1,)), ((), ())),
                             preferred_element_type=jnp.float32)     # (TQ, HW_pad)

    if hw_valid is not None:
        # Padded key columns must not receive softmax mass.
        col = lax.broadcasted_iota(jnp.int32, energy.shape, 1)
        energy = jnp.where(col < hw_valid, energy, -jnp.inf)

    # Max-stabilized row softmax; divide -> EUP reciprocal + VPU multiply.
    m = jnp.max(energy, axis=-1, keepdims=True)
    e = jnp.exp(energy - m)
    s = jnp.sum(e, axis=-1, keepdims=True)
    out_ref[0] = (e * pl.reciprocal(s, approx=True)).astype(out_ref.dtype)


# ---------------------------------------------------------------------------
# VMEM sizing helpers
# ---------------------------------------------------------------------------
_VMEM_BUDGET = 40 * 1024 * 1024  # conservative: leaves headroom inside v7x's 64 MiB


def _vmem_estimate(tq, hw_pad, c8, out_itemsize):
    f32 = 4
    q_in = 2 * tq * c8 * f32               # double-buffered Q tile
    k_in = 2 * hw_pad * c8 * f32           # double-buffered K slab
    out = 2 * tq * hw_pad * out_itemsize   # double-buffered output tile
    tmp = 3 * tq * hw_pad * f32            # energy / exp / normalized temporaries
    return q_in + k_in + out + tmp


def _pick_tq(hw_pad, c8, out_itemsize):
    for tq in (512, 256, 128):
        if hw_pad % tq == 0 and _vmem_estimate(tq, hw_pad, c8, out_itemsize) <= _VMEM_BUDGET:
            return tq
    return 128


def _vmem_limit_bytes(tq, hw_pad, c8, out_itemsize):
    est = _vmem_estimate(tq, hw_pad, c8, out_itemsize)
    return int(min(max(int(est * 1.3) + (4 << 20), 16 << 20), 64 << 20))


# ---------------------------------------------------------------------------
# Public wrapper: PyTorch-style NCHW input and (C8, C, 1, 1) conv weights
# ---------------------------------------------------------------------------
def sae_forward(x, wq, bq, wk, bk, *, out_dtype=None):
    """x: (N, C, H, W). wq/wk: (C8, C, 1, 1). bq/bk: (C8,).

    Returns attention of shape (N, H*W, H*W), matching the PyTorch module.
    """
    N, C, H, W = x.shape
    C8 = wq.shape[0]
    HW = H * W
    HW_pad = ((HW + 127) // 128) * 128        # lane-align the spatial axis
    out_dtype = x.dtype if out_dtype is None else out_dtype
    out_itemsize = jnp.dtype(out_dtype).itemsize

    # NCHW -> (N, HW, C); zero-pad spatial rows to HW_pad.
    x_flat = jnp.transpose(x, (0, 2, 3, 1)).reshape(N, HW, C)
    if HW_pad != HW:
        x_flat = jnp.pad(x_flat, ((0, 0), (0, HW_pad - HW), (0, 0)))

    # Fuse the two 1x1 convs into one matmul: (C, 2*C8) weights, (1, 2*C8) bias.
    w_qk = jnp.concatenate(
        [jnp.transpose(wq.reshape(C8, C)), jnp.transpose(wk.reshape(C8, C))], axis=1)
    b_qk = jnp.concatenate([bq, bk]).reshape(1, 2 * C8)

    # ---- Stage 1: Q/K projection pre-pass (once per spatial row) ----
    ts = 256 if HW_pad % 256 == 0 else 128
    q_all, k_all = pl.pallas_call(
        functools.partial(_qk_project_kernel, c8=C8),
        out_shape=(jax.ShapeDtypeStruct((N, HW_pad, C8), jnp.float32),
                   jax.ShapeDtypeStruct((N, HW_pad, C8), jnp.float32)),
        grid_spec=pltpu.PrefetchScalarGridSpec(
            num_scalar_prefetch=0,
            grid=(N, HW_pad // ts),
            in_specs=[
                pl.BlockSpec((1, ts, C), lambda n, s: (n, s, 0)),
                pl.BlockSpec((C, 2 * C8), lambda n, s: (0, 0)),
                pl.BlockSpec((1, 2 * C8), lambda n, s: (0, 0)),
            ],
            out_specs=[
                pl.BlockSpec((1, ts, C8), lambda n, s: (n, s, 0)),
                pl.BlockSpec((1, ts, C8), lambda n, s: (n, s, 0)),
            ],
        ),
        compiler_params=pltpu.CompilerParams(
            dimension_semantics=("parallel", "parallel")),
    )(x_flat, w_qk, b_qk)

    # ---- Stage 2: attention = softmax(Q K^T) over (TQ, HW) tiles ----
    tq = _pick_tq(HW_pad, C8, out_itemsize)
    vmem_limit = _vmem_limit_bytes(tq, HW_pad, C8, out_itemsize)
    hw_valid = None if HW_pad == HW else HW

    attn = pl.pallas_call(
        functools.partial(_sae_attention_kernel, hw_valid=hw_valid),
        out_shape=jax.ShapeDtypeStruct((N, HW_pad, HW_pad), out_dtype),
        grid_spec=pltpu.PrefetchScalarGridSpec(
            num_scalar_prefetch=0,
            grid=(N, HW_pad // tq),
            in_specs=[
                pl.BlockSpec((1, tq, C8), lambda n, qi: (n, qi, 0)),
                pl.BlockSpec((1, HW_pad, C8), lambda n, qi: (n, 0, 0)),
            ],
            out_specs=pl.BlockSpec((1, tq, HW_pad), lambda n, qi: (n, qi, 0)),
        ),
        compiler_params=pltpu.CompilerParams(
            dimension_semantics=("parallel", "parallel"),
            vmem_limit_bytes=vmem_limit),
    )(q_all, k_all)

    if HW_pad != HW:
        attn = attn[:, :HW, :HW]
    return attn


# ---------------------------------------------------------------------------
# Pure-JAX reference (same math, no Pallas) for a sanity check
# ---------------------------------------------------------------------------
def sae_reference(x, wq, bq, wk, bk):
    N, C, H, W = x.shape
    C8 = wq.shape[0]
    HW = H * W
    wq2 = wq.reshape(C8, C)
    wk2 = wk.reshape(C8, C)
    q = jnp.einsum("nchw,dc->ndhw", x, wq2,
                   precision=lax.Precision.HIGHEST) + bq[None, :, None, None]
    k = jnp.einsum("nchw,dc->ndhw", x, wk2,
                   precision=lax.Precision.HIGHEST) + bk[None, :, None, None]
    q = q.reshape(N, C8, HW).transpose(0, 2, 1)              # (N, HW, C8)
    k = k.reshape(N, C8, HW)                                 # (N, C8, HW)
    energy = jnp.einsum("npc,ncq->npq", q, k,
                        precision=lax.Precision.HIGHEST)     # (N, HW, HW)
    return jax.nn.softmax(energy, axis=-1)


if __name__ == "__main__":
    key = jax.random.PRNGKey(0)
    k0, k1, k2, k3, k4 = jax.random.split(key, 5)

    # in_dim must be >= 8 so that in_dim // 8 >= 1 (module constraint).
    N, C, H, W = 2, 32, 16, 16
    C8 = C // 8

    x = jax.random.normal(k0, (N, C, H, W), jnp.float32)
    wq = jax.random.normal(k1, (C8, C, 1, 1), jnp.float32) * 0.1
    bq = jax.random.normal(k2, (C8,), jnp.float32) * 0.1
    wk = jax.random.normal(k3, (C8, C, 1, 1), jnp.float32) * 0.1
    bk = jax.random.normal(k4, (C8,), jnp.float32) * 0.1

    out = jax.jit(sae_forward)(x, wq, bq, wk, bk)
    out = jax.block_until_ready(out)

    ref = sae_reference(x, wq, bq, wk, bk)
    assert out.shape == (N, H * W, H * W)
    # Tolerance loosened slightly vs. v1: the softmax normalization uses the
    # EUP approximate reciprocal (pl.reciprocal(approx=True)).
    assert jnp.allclose(out, ref, atol=2e-3, rtol=2e-3), "mismatch vs reference"

    print("KERNEL_OK")
</pallas_src>

<mosaic_0001>
module attributes {stable_mosaic.version = 11 : i64} {
  func.func @_qk_project_kernel(%arg0: i32, %arg1: i32, %arg2: memref<1x256x32xf32, #tpu.memory_space<vmem>>, %arg3: memref<32x8xf32, #tpu.memory_space<vmem>>, %arg4: memref<1x8xf32, #tpu.memory_space<vmem>>, %arg5: memref<1x256x4xf32, #tpu.memory_space<vmem>>, %arg6: memref<1x256x4xf32, #tpu.memory_space<vmem>>) attributes {dimension_semantics = [#tpu.dimension_semantics<parallel>, #tpu.dimension_semantics<parallel>], iteration_bounds = array<i64: 2, 1>, scalar_prefetch = 0 : i64, scratch_operands = 0 : i64, tpu.core_type = #tpu.core_type<tc>, window_params = [{transform_indices = @transform_0, window_bounds = array<i64: 1, 256, 32>}, {pipeline_mode = #tpu.pipeline_mode<synchronous>, transform_indices = @transform_1, window_bounds = array<i64: 32, 8>}, {pipeline_mode = #tpu.pipeline_mode<synchronous>, transform_indices = @transform_2, window_bounds = array<i64: 1, 8>}, {transform_indices = @transform_3, window_bounds = array<i64: 1, 256, 4>}, {transform_indices = @transform_4, window_bounds = array<i64: 1, 256, 4>}]} {
    %c0 = arith.constant 0 : index
    %c0_0 = arith.constant 0 : index
    %c0_1 = arith.constant 0 : index
    %0 = vector.load %arg2[%c0, %c0_0, %c0_1] : memref<1x256x32xf32, #tpu.memory_space<vmem>>, vector<1x256x32xf32>
    %1 = vector.shape_cast %0 : vector<1x256x32xf32> to vector<256x32xf32>
    %c0_2 = arith.constant 0 : index
    %c0_3 = arith.constant 0 : index
    %2 = vector.load %arg3[%c0_2, %c0_3] : memref<32x8xf32, #tpu.memory_space<vmem>>, vector<32x8xf32>
    %cst = arith.constant dense<0.000000e+00> : vector<256x8xf32>
    %3 = tpu.matmul %1, %2, %cst {dimension_numbers = #tpu.dot_dimension_numbers<[1], [0], [0], [1], [0, 0, 1, 1], [], []>} : vector<256x32xf32>, vector<32x8xf32>, vector<256x8xf32> -> vector<256x8xf32>
    %c0_4 = arith.constant 0 : index
    %c0_5 = arith.constant 0 : index
    %4 = vector.load %arg4[%c0_4, %c0_5] : memref<1x8xf32, #tpu.memory_space<vmem>>, vector<1x8xf32>
    %5 = vector.broadcast %4 : vector<1x8xf32> to vector<256x8xf32>
    %6 = arith.addf %3, %5 : vector<256x8xf32>
    %7 = vector.extract_strided_slice %6 {offsets = [0, 0], sizes = [256, 4], strides = [1, 1]} : vector<256x8xf32> to vector<256x4xf32>
    %c0_6 = arith.constant 0 : index
    %c0_7 = arith.constant 0 : index
    %c0_8 = arith.constant 0 : index
    %8 = vector.load %arg5[%c0_6, %c0_7, %c0_8] : memref<1x256x4xf32, #tpu.memory_space<vmem>>, vector<1x256x4xf32>
    %9 = vector.shape_cast %8 : vector<1x256x4xf32> to vector<256x4xf32>
    %10 = vector.shape_cast %7 : vector<256x4xf32> to vector<1x256x4xf32>
    tpu.vector_store %arg5[%c0_6, %c0_7, %c0_8], %10 {strides = array<i32>} : memref<1x256x4xf32, #tpu.memory_space<vmem>>, vector<1x256x4xf32>,
    %11 = vector.extract_strided_slice %6 {offsets = [0, 4], sizes = [256, 4], strides = [1, 1]} : vector<256x8xf32> to vector<256x4xf32>
    %c0_9 = arith.constant 0 : index
    %c0_10 = arith.constant 0 : index
    %c0_11 = arith.constant 0 : index
    %12 = vector.load %arg6[%c0_9, %c0_10, %c0_11] : memref<1x256x4xf32, #tpu.memory_space<vmem>>, vector<1x256x4xf32>
    %13 = vector.shape_cast %12 : vector<1x256x4xf32> to vector<256x4xf32>
    %14 = vector.shape_cast %11 : vector<256x4xf32> to vector<1x256x4xf32>
    tpu.vector_store %arg6[%c0_9, %c0_10, %c0_11], %14 {strides = array<i32>} : memref<1x256x4xf32, #tpu.memory_space<vmem>>, vector<1x256x4xf32>,
    return
  }
  func.func @transform_0(%arg0: i32, %arg1: i32) -> (i32, i32, i32) {
    %c0_i32 = arith.constant 0 : i32
    %c0_i32_0 = arith.constant 0 : i32
    return %arg0, %arg1, %c0_i32 : i32, i32, i32
  }
  func.func @transform_1(%arg0: i32, %arg1: i32) -> (i32, i32) {
    %c0_i32 = arith.constant 0 : i32
    %c0_i32_0 = arith.constant 0 : i32
    %c0_i32_1 = arith.constant 0 : i32
    return %c0_i32, %c0_i32_0 : i32, i32
  }
  func.func @transform_2(%arg0: i32, %arg1: i32) -> (i32, i32) {
    %c0_i32 = arith.constant 0 : i32
    %c0_i32_0 = arith.constant 0 : i32
    %c0_i32_1 = arith.constant 0 : i32
    return %c0_i32, %c0_i32_0 : i32, i32
  }
  func.func @transform_3(%arg0: i32, %arg1: i32) -> (i32, i32, i32) {
    %c0_i32 = arith.constant 0 : i32
    %c0_i32_0 = arith.constant 0 : i32
    return %arg0, %arg1, %c0_i32 : i32, i32, i32
  }
  func.func @transform_4(%arg0: i32, %arg1: i32) -> (i32, i32, i32) {
    %c0_i32 = arith.constant 0 : i32
    %c0_i32_0 = arith.constant 0 : i32
    return %arg0, %arg1, %c0_i32 : i32, i32, i32
  }
}

module attributes {stable_mosaic.version = 11 : i64} {
  func.func @_sae_attention_kernel(%arg0: i32, %arg1: i32, %arg2: memref<1x256x4xf32, #tpu.memory_space<vmem>>, %arg3: memref<1x256x4xf32, #tpu.memory_space<vmem>>, %arg4: memref<1x256x256xf32, #tpu.memory_space<vmem>>) attributes {dimension_semantics = [#tpu.dimension_semantics<parallel>, #tpu.dimension_semantics<parallel>], iteration_bounds = array<i64: 2, 1>, scalar_prefetch = 0 : i64, scratch_operands = 0 : i64, tpu.core_type = #tpu.core_type<tc>, window_params = [{transform_indices = @transform_0, window_bounds = array<i64: 1, 256, 4>}, {transform_indices = @transform_1, window_bounds = array<i64: 1, 256, 4>}, {transform_indices = @transform_2, window_bounds = array<i64: 1, 256, 256>}]} {
    %c0 = arith.constant 0 : index
    %c0_0 = arith.constant 0 : index
    %c0_1 = arith.constant 0 : index
    %0 = vector.load %arg2[%c0, %c0_0, %c0_1] : memref<1x256x4xf32, #tpu.memory_space<vmem>>, vector<1x256x4xf32>
    %1 = vector.shape_cast %0 : vector<1x256x4xf32> to vector<256x4xf32>
    %c0_2 = arith.constant 0 : index
    %c0_3 = arith.constant 0 : index
    %c0_4 = arith.constant 0 : index
    %2 = vector.load %arg3[%c0_2, %c0_3, %c0_4] : memref<1x256x4xf32, #tpu.memory_space<vmem>>, vector<1x256x4xf32>
    %3 = vector.shape_cast %2 : vector<1x256x4xf32> to vector<256x4xf32>
    %cst = arith.constant dense<0.000000e+00> : vector<256x256xf32>
    %4 = tpu.matmul %1, %3, %cst {dimension_numbers = #tpu.dot_dimension_numbers<[1], [1], [0], [0], [0, 0, 1, 0], [], []>} : vector<256x4xf32>, vector<256x4xf32>, vector<256x256xf32> -> vector<256x256xf32>
    %cst_5 = arith.constant dense<0xFF800000> : vector<256xf32>
    %5 = vector.multi_reduction <maximumf>, %4, %cst_5 [1] : vector<256x256xf32> to vector<256xf32>
    %6 = vector.shape_cast %5 : vector<256xf32> to vector<256x1xf32>
    %7 = vector.broadcast %6 : vector<256x1xf32> to vector<256x256xf32>
    %8 = arith.subf %4, %7 : vector<256x256xf32>
    %9 = math.exp %8 : vector<256x256xf32>
    %cst_6 = arith.constant dense<0.000000e+00> : vector<256xf32>
    %10 = vector.multi_reduction <add>, %9, %cst_6 [1] : vector<256x256xf32> to vector<256xf32>
    %11 = vector.shape_cast %10 : vector<256xf32> to vector<256x1xf32>
    %12 = tpu.reciprocal %11 {approx = true} : vector<256x1xf32> -> vector<256x1xf32>
    %13 = vector.broadcast %12 : vector<256x1xf32> to vector<256x256xf32>
    %14 = arith.mulf %9, %13 : vector<256x256xf32>
    %c0_7 = arith.constant 0 : index
    %c0_8 = arith.constant 0 : index
    %c0_9 = arith.constant 0 : index
    %15 = vector.load %arg4[%c0_7, %c0_8, %c0_9] : memref<1x256x256xf32, #tpu.memory_space<vmem>>, vector<1x256x256xf32>
    %16 = vector.shape_cast %15 : vector<1x256x256xf32> to vector<256x256xf32>
    %17 = vector.shape_cast %14 : vector<256x256xf32> to vector<1x256x256xf32>
    tpu.vector_store %arg4[%c0_7, %c0_8, %c0_9], %17 {strides = array<i32>} : memref<1x256x256xf32, #tpu.memory_space<vmem>>, vector<1x256x256xf32>,
    return
  }
  func.func @transform_0(%arg0: i32, %arg1: i32) -> (i32, i32, i32) {
    %c0_i32 = arith.constant 0 : i32
    %c0_i32_0 = arith.constant 0 : i32
    return %arg0, %arg1, %c0_i32 : i32, i32, i32
  }
  func.func @transform_1(%arg0: i32, %arg1: i32) -> (i32, i32, i32) {
    %c0_i32 = arith.constant 0 : i32
    %c0_i32_0 = arith.constant 0 : i32
    %c0_i32_1 = arith.constant 0 : i32
    return %arg0, %c0_i32, %c0_i32_0 : i32, i32, i32
  }
  func.func @transform_2(%arg0: i32, %arg1: i32) -> (i32, i32, i32) {
    %c0_i32 = arith.constant 0 : i32
    %c0_i32_0 = arith.constant 0 : i32
    return %arg0, %arg1, %c0_i32 : i32, i32, i32
  }
}

</mosaic_0001>

<bundles_post_ra>
// kernel: sae_forward.2
= control target key start
LH: loop header
LB: loop body
LE: loop exit
PB: predicated region body
PF: predicated region fallthrough
CT: control target
= control target key end

     0   :  { %10 = vsyncpa [#allocation3], 0  ;;  %s1710_s0 = inlined_call_operand.hbm [shape: f32[2,256,32], index: 0, kind: input, shape index: {}]   ;;  %s1711_s1 = inlined_call_operand.vmem [shape: f32[32,8], index: 1, kind: input, shape index: {}]   ;;  %s1712_s2 = inlined_call_operand.vmem [shape: f32[1,8], index: 2, kind: input, shape index: {}]   ;;  %s1713_s3 = inlined_call_operand.vmem [shape: f32[2,256,4], index: 3, kind: output, shape index: {0}]   ;;  %s1714_s4 = inlined_call_operand.vmem [shape: f32[2,256,4], index: 4, kind: output, shape index: {1}]  }
   0x1   :  { %12 = vsyncpa [#allocation3 + $0x1], 0  ;;  %s1297_s15 = smov 0   ;;  %s1299_s16 = smov 0  }
   0x2   :  { %s1301_s17 = smov 0   ;;  %s1303_s18 = smov 0  }
   0x3   :  { %s1305_s19 = smov 0   ;;  %s1307_s20 = smov 0  }
   0x4 LB: > { %s973_s21 = sadd.s32 4294967295, %s1266_s20   ;;  %s30_s22 = sadd.s32 1, %s1262_s19  ;;  %s1266_s20 = sphi %s1307_s20, %s18_s20   ;;  %s1262_s19 = sphi %s1305_s19, %s1722_s19   ;;  %s1258_s18 = sphi %s1303_s18, %s1721_s18   ;;  %s1254_s17 = sphi %s1301_s17, %s1720_s17   ;;  %s1250_s16 = sphi %s1299_s16, %s1719_s16   ;;  %s1246_s15 = sphi %s1297_s15, %s1718_s15  }
   0x5   : > { %p32_p0 = scmp.ge.s32.totalorder %s30_s22, 2  ;;  %s39_s23 = sadd.s32 1, %s1254_s17 }
   0x6   : > { %p46_p1 = scmp.ne.s32.totalorder %s1254_s17, %s1250_s16  ;;  %p47_p2 = scmp.eq.s32.totalorder %s1266_s20, 0 }
   0x7   : > { %s1724_s22 = smov (%p32_p0, %s30_s22), 0  ;;  %p52_p4 = scmp.ne.s32.totalorder %s1250_s16, %s1246_s15 }
   0x8   : > { %p1333_p3 = por %p47_p2, %p46_p1  ;;  %s34_s25 = ssub.s32 %s1262_s19, %s1724_s22 }
   0x9   : > { %p53_p5 = scmp.eq.s32.totalorder %s973_s21, 0  ;;  %p37_p6 = scmp.eq.s32.totalorder %s34_s25, 0 }
   0xa   : > { %p1134_p8 = scmp.lt.s32.totalorder %s1266_s20, 2  ;;  %s180_s28 = sand.u32 1, %s1254_s17  }
   0xb   : > { %p1340_p7 = por %p53_p5, %p52_p4  ;;  %s1021_s29 = sshll.u32 %s1262_s19, 12 }
   0xc   : > { %s1346_s27 = scalar_select %p37_p6, %s1254_s17, %s39_s23  }
   0xd   : > { %s977_s30 = sshll.u32 %s180_s28, 8  ;;  %s1353_s7 = scalar_lea.hbm %s1710_s0, %s1021_s29 }
   0xe   : > { %s184_s8 = scalar_lea.vmem [#allocation2], %s977_s30  ;;  %p1357_p9 = pnand %p1134_p8, %p1333_p3 }
   0xf   : > { %s193_s9 = sshll.u32 %s184_s8, 4  ;;  %s1363_s11 = scalar_lea.sflag [#allocation3], %s180_s28  ;;  %s1361_s9 = int_to_ptr.vmem [resolvable:$true] %s193_s9 }
  0x10   : > { %s1186_s12 = scalar_lea.hbm %s1353_s7, 4096  ;;  %p1188_p11 = pneg %p1357_p9 }
  0x11   : > { %p1187_p10 = scmp.ne.s32.totalorder %s1353_s7, %s1186_s12  ;;  %s1191_s15 = scalar_lea.hbm %s1710_s0, 8192 }
  0x12   : > { %p1192_p0 = scmp.lt.u32.totalorder %s1353_s7, %s1710_s0  ;;  %p1193_p1 = scmp.lt.u32.totalorder %s1191_s15, %s1186_s12 }
  0x13   : > { %p1189_p12 = pnand %p1188_p11, %p1187_p10  ;;  %p1195_p3 = scmp.lt.u32.totalorder %s1186_s12, %s1353_s7 }
  0x14   : > { %p1194_p2 = por %p1193_p1, %p1192_p0 }
  0x15   : > { %p1190_p13 = pneg %p1189_p12 }
  0x16   : > { %p1196_p4 = por %p1195_p3, %p1194_p2 }
  0x18   : > { %p1197_p5 = pnand %p1196_p4, %p1190_p13 }
  0x1a   : > { %1200 = shalt.err (!%p1197_p5)
}
  0x1b   : > { %s1201_s24 = scalar_lea.vmem %s1361_s9, 4096  ;;  %s1268_s25 = smov [#allocation2]  }
  0x1c   : > { %p1202_p6 = scmp.ne.s32.totalorder %s1361_s9, %s1201_s24  ;;  %s1206_s28 = sshll.u32 %s1268_s25, 4  ;;  %s1207_s28 = int_to_ptr.vmem [resolvable:$false] %s1206_s28 }
  0x1d   : > { %s1208_s29 = scalar_lea.vmem %s1207_s28, 8192  ;;  %p1209_p12 = scmp.lt.s32.totalorder %s1361_s9, %s1207_s28 }
  0x1e   : > { %p1204_p8 = pnand %p1202_p6, %p1188_p11  ;;  %p1210_p0 = scmp.lt.s32.totalorder %s1208_s29, %s1201_s24 }
  0x20   : > { %p1205_p10 = pneg %p1204_p8  ;;  %p1211_p1 = por %p1210_p0, %p1209_p12 }
  0x22   : > { %p1212_p2 = pnand %p1211_p1, %p1205_p10 }
  0x24   : > { %1215 = shalt.err (!%p1212_p2)
}
  0x25   : > { %s1269_s30 = smov 128   ;;  %s1270_s5 = smov 8  }
  0x26   : > { %1133 = dma.hbm_to_vmem [thread:$0]  (!%p1357_p9), %s1353_s7, 4096, %s1361_s9, %s1363_s11, %s1269_s30, %s1269_s30, %s1270_s5  }
  0x27   : > { %p980_p11 = scmp.ge.s32.totalorder %s1266_s20, 1  ;;  %p201_p13 = scmp.lt.s32.totalorder %s1266_s20, 3 }
  0x29   : > { %p202_p3 = pnand %p980_p11, %p201_p13 }
  0x2a   : > { %s207_s6 = sand.u32 (!%p202_p3), 1, %s1250_s16  }
  0x2b   : > { %205 = sbr.rel (%p202_p3) target bundleno = 453 (0x1c5), region = 32  ;;  %s981_s8 = sshll.u32 (!%p202_p3), %s207_s6, 8 }
  0x2c   : > { %s208_s12 = scalar_lea.sflag (!%p202_p3), [#allocation3], %s207_s6  ;;  %s1394_s13 = scalar_lea.vmem (!%p202_p3), [#allocation2], %s981_s8 }
  0x32   : > { %1241 = dma.done.wait (%p1340_p7), %s208_s12, 4096  }
  0x33   : > { %1243 = vsyncadd (%p1340_p7), %s208_s12, 4294963200  ;;  %vm313_vm0 = vcmask 261120   ;;  %v302_v0 = vld [vmem:[%s1711_s1] sm:$0xff]  ;;  %v303_v1 = vld [vmem:[%s1711_s1 + $0x8] sm:$0xff]  ;;  %p251_p7 = scmp.lt.s32.totalorder %s1258_s18, 1  ;;  %vm635_vm1 = vcmask 31744  }
  0x34   : > { %v304_v2 = vld [vmem:[%s1711_s1 + $0x10] sm:$0xff]  ;;  %v1116_v3 = vpack.c.bf16 %v303_v1, %v302_v0  ;;  %v305_v4 = vld [vmem:[%s1711_s1 + $0x18] sm:$0xff]  ;;  %v270_v5 = vld [vmem:[%s1394_s13] sm:$0xff]  ;;  %s1271_s5 = smov 124  }
  0x35   : > { %v286_v6 = vld [vmem:[%s1394_s13 + $0x80] sm:$0xff]  ;;  %v1120_v7 = vpack.c.bf16 %v305_v4, %v304_v2  ;;  %1068 = vmatprep.mubr.msk.f32.mxu0 %vm313_vm0, %v270_v5  ;;  %v271_v8 = vld [vmem:[%s1394_s13 + $0x8] sm:$0xff]  ;;  %v272_v10 = vld [vmem:[%s1394_s13 + $0x10] sm:$0xff]  ;;  %s1726_s18 = smov (!%p251_p7, %s1258_s18), 1 }
  0x36   : > { %1092 = vmatprep.mubr.msk.f32.mxu1 %vm313_vm0, %v286_v6  ;;  %1117 = vmatprep.subr.bf16.mxu0 %v1116_v3  ;;  %v287_v9 = vld [vmem:[%s1394_s13 + $0x88] sm:$0xff]  ;;  %v288_v11 = vld [vmem:[%s1394_s13 + $0x90] sm:$0xff]  ;;  %v273_v12 = vld [vmem:[%s1394_s13 + $0x18] sm:$0xff]  ;;  %s1022_s23 = sshll.u32 %s1726_s18, 8 }
  0x37   : > { %1124 = vmatprep.subr.bf16.mxu1 %v1116_v3  ;;  %1119 = vmatpush3.bf16.msra.mxu0 %v1116_v3  ;;  %v289_v13 = vld [vmem:[%s1394_s13 + $0x98] sm:$0xff]  ;;  %v274_v14 = vld [vmem:[%s1394_s13 + $0x20] sm:$0xff]  ;;  %v275_v16 = vld [vmem:[%s1394_s13 + $0x28] sm:$0xff]  ;;  %s1491_s30 = scalar_lea.vmem %s1713_s3, %s1022_s23  ;;  %s1626_s12 = scalar_lea.vmem %s1714_s4, %s1022_s23 }
  0x38   : > { %1126 = vmatpush3.bf16.msra.mxu1 %v1116_v3  ;;  %1121 = vmatprep.subr.bf16.mxu0 %v1120_v7  ;;  %v290_v15 = vld [vmem:[%s1394_s13 + $0xa0] sm:$0xff]  ;;  %v291_v17 = vld [vmem:[%s1394_s13 + $0xa8] sm:$0xff]  ;;  %v276_v18 = vld [vmem:[%s1394_s13 + $0x30] sm:$0xff] }
  0x39   : > { %1125 = vmatprep.subr.bf16.mxu1 %v1120_v7  ;;  %v292_v19 = vld [vmem:[%s1394_s13 + $0xb0] sm:$0xff]  ;;  %v277_v20 = vld [vmem:[%s1394_s13 + $0x38] sm:$0xff]  ;;  %v278_v22 = vld [vmem:[%s1394_s13 + $0x40] sm:$0xff] }
  0x3a   : > { %v293_v21 = vld [vmem:[%s1394_s13 + $0xb8] sm:$0xff]  ;;  %v294_v23 = vld [vmem:[%s1394_s13 + $0xc0] sm:$0xff]  ;;  %v279_v24 = vld [vmem:[%s1394_s13 + $0x48] sm:$0xff] }
  0x3b   : > { %1123 = vmatpush3.bf16.msra.mxu0 %v1120_v7  ;;  %v295_v25 = vld [vmem:[%s1394_s13 + $0xc8] sm:$0xff]  ;;  %v280_v26 = vld [vmem:[%s1394_s13 + $0x50] sm:$0xff]  ;;  %v281_v28 = vld [vmem:[%s1394_s13 + $0x58] sm:$0xff] }
  0x3c   : > { %1127 = vmatpush3.bf16.msra.mxu1 %v1120_v7  ;;  %v296_v27 = vld [vmem:[%s1394_s13 + $0xd0] sm:$0xff]  ;;  %v297_v29 = vld [vmem:[%s1394_s13 + $0xd8] sm:$0xff]  ;;  %v282_v30 = vld [vmem:[%s1394_s13 + $0x60] sm:$0xff] }
  0x3d   : > { %v298_v31 = vld [vmem:[%s1394_s13 + $0xe0] sm:$0xff]  ;;  %v283_v32 = vld [vmem:[%s1394_s13 + $0x68] sm:$0xff]  ;;  %v284_v34 = vld [vmem:[%s1394_s13 + $0x70] sm:$0xff] }
  0x3e   : > { %1069 = vmatmul.mubr.msk.f32.vlgmr.msra.gmra.mrb[0].mxu0 %vm313_vm0, %v271_v8  ;;  %v299_v33 = vld [vmem:[%s1394_s13 + $0xe8] sm:$0xff]  ;;  %v300_v35 = vld [vmem:[%s1394_s13 + $0xf0] sm:$0xff]  ;;  %v285_v36 = vld [vmem:[%s1394_s13 + $0x78] sm:$0xff] }
  0x3f   : > { %1093 = vmatmul.mubr.msk.f32.vlgmr.msra.gmra.mrb[0].mxu1 %vm313_vm0, %v287_v9  ;;  %1071 = vmatprep.mubr.msk.f32.mxu0 %vm313_vm0, %v272_v10  ;;  %v301_v37 = vld [vmem:[%s1394_s13 + $0xf8] sm:$0xff]  ;;  %v1484_v38 = vld [vmem:[%s1712_s2] ss:$0 sm:$0xff] }
  0x40   : > { %1095 = vmatprep.mubr.msk.f32.mxu1 %vm313_vm0, %v288_v11 }
  0x42   : > { %1072 = vmatmul.mubr.msk.f32.gmra.mrb[2].mxu0 %vm313_vm0, %v273_v12 }
  0x43   : > { %1096 = vmatmul.mubr.msk.f32.gmra.mrb[2].mxu1 %vm313_vm0, %v289_v13  ;;  %1074 = vmatprep.mubr.msk.f32.mxu0 %vm313_vm0, %v274_v14 }
  0x44   : > { %1098 = vmatprep.mubr.msk.f32.mxu1 %vm313_vm0, %v290_v15 }
  0x46   : > { %1075 = vmatmul.mubr.msk.f32.gmra.mrb[4].mxu0 %vm313_vm0, %v275_v16 }
  0x47   : > { %1099 = vmatmul.mubr.msk.f32.gmra.mrb[4].mxu1 %vm313_vm0, %v291_v17  ;;  %1077 = vmatprep.mubr.msk.f32.mxu0 %vm313_vm0, %v276_v18 }
  0x48   : > { %1101 = vmatprep.mubr.msk.f32.mxu1 %vm313_vm0, %v292_v19 }
  0x4a   : > { %1078 = vmatmul.mubr.msk.f32.gmra.mrb[6].mxu0 %vm313_vm0, %v277_v20 }
  0x4b   : > { %1102 = vmatmul.mubr.msk.f32.gmra.mrb[6].mxu1 %vm313_vm0, %v293_v21  ;;  %1080 = vmatprep.mubr.msk.f32.mxu0 %vm313_vm0, %v278_v22 }
  0x4c   : > { %1104 = vmatprep.mubr.msk.f32.mxu1 %vm313_vm0, %v294_v23 }
  0x4e   : > { %1081 = vmatmul.mubr.msk.f32.gmra.mrb[8].mxu0 %vm313_vm0, %v279_v24 }
  0x4f   : > { %1105 = vmatmul.mubr.msk.f32.gmra.mrb[8].mxu1 %vm313_vm0, %v295_v25  ;;  %1083 = vmatprep.mubr.msk.f32.mxu0 %vm313_vm0, %v280_v26 }
  0x50   : > { %1107 = vmatprep.mubr.msk.f32.mxu1 %vm313_vm0, %v296_v27 }
  0x52   : > { %1084 = vmatmul.mubr.msk.f32.gmra.mrb[10].mxu0 %vm313_vm0, %v281_v28 }
  0x53   : > { %1108 = vmatmul.mubr.msk.f32.gmra.mrb[10].mxu1 %vm313_vm0, %v297_v29  ;;  %1086 = vmatprep.mubr.msk.f32.mxu0 %vm313_vm0, %v282_v30 }
  0x54   : > { %1110 = vmatprep.mubr.msk.f32.mxu1 %vm313_vm0, %v298_v31 }
  0x56   : > { %1087 = vmatmul.mubr.msk.f32.gmra.mrb[12].mxu0 %vm313_vm0, %v283_v32 }
  0x57   : > { %1111 = vmatmul.mubr.msk.f32.gmra.mrb[12].mxu1 %vm313_vm0, %v299_v33  ;;  %1089 = vmatprep.mubr.msk.f32.mxu0 %vm313_vm0, %v284_v34 }
  0x58   : > { %1113 = vmatprep.mubr.msk.f32.mxu1 %vm313_vm0, %v300_v35 }
  0x5a   : > { %1090 = vmatmul.mubr.msk.f32.gmra.mrb[14].mxu0 %vm313_vm0, %v285_v36 }
  0x5b   : > { %1114 = vmatmul.mubr.msk.f32.gmra.mrb[14].mxu1 %vm313_vm0, %v301_v37 }
 0x111   : > { %v1070_v39 = vpop.f32.mrb[0].mxu0 }
 0x112   : > { %v1094_v40 = vpop.f32.mrb[0].mxu1  ;;  %v482_v41 = vadd.f32 %v1070_v39, %v1484_v38  ;;  %v476_v43 = vpop.f32.mrb[1].mxu0 }
 0x113   : > { %v562_v42 = vadd.f32 %v1094_v40, %v1484_v38  ;;  %v556_v44 = vpop.f32.mrb[1].mxu1  ;;  %v477_v45 = vadd.f32 %v1484_v38, %v476_v43 }
 0x114   : > { %v557_v46 = vadd.f32 %v1484_v38, %v556_v44  ;;  %637 = vst.msk [vmem:[%s1491_s30 + $0x8] sm:$0xff] %vm635_vm1, %v482_v41  ;;  %702 = vrot.lane.b32.xlu0 %v482_v41, %s1271_s5 }
 0x115   : > { %653 = vst.msk [vmem:[%s1491_s30 + $0x88] sm:$0xff] %vm635_vm1, %v562_v42  ;;  %734 = vrot.lane.b32.xlu1 %v562_v42, %s1271_s5  ;;  %636 = vst.msk [vmem:[%s1491_s30] sm:$0xff] %vm635_vm1, %v477_v45  ;;  %v1073_v47 = vpop.f32.mrb[2].mxu0 }
 0x116   : > { %652 = vst.msk [vmem:[%s1491_s30 + $0x80] sm:$0xff] %vm635_vm1, %v557_v46  ;;  %v1097_v48 = vpop.f32.mrb[2].mxu1  ;;  %v492_v49 = vadd.f32 %v1073_v47, %v1484_v38  ;;  %v486_v50 = vpop.f32.mrb[3].mxu0 }
 0x117   : > { %v572_v51 = vadd.f32 %v1097_v48, %v1484_v38  ;;  %v566_v52 = vpop.f32.mrb[3].mxu1  ;;  %v487_v53 = vadd.f32 %v1484_v38, %v486_v50 }
 0x118   : > { %v567_v54 = vadd.f32 %v1484_v38, %v566_v52  ;;  %639 = vst.msk [vmem:[%s1491_s30 + $0x18] sm:$0xff] %vm635_vm1, %v492_v49  ;;  %700 = vrot.lane.b32.xlu0 %v477_v45, %s1271_s5 }
 0x119   : > { %655 = vst.msk [vmem:[%s1491_s30 + $0x98] sm:$0xff] %vm635_vm1, %v572_v51  ;;  %706 = vrot.lane.b32.xlu1 %v492_v49, %s1271_s5  ;;  %638 = vst.msk [vmem:[%s1491_s30 + $0x10] sm:$0xff] %vm635_vm1, %v487_v53  ;;  %v1076_v55 = vpop.f32.mrb[4].mxu0 }
 0x11a   : > { %654 = vst.msk [vmem:[%s1491_s30 + $0x90] sm:$0xff] %vm635_vm1, %v567_v54  ;;  %v1100_v56 = vpop.f32.mrb[4].mxu1  ;;  %v502_v57 = vadd.f32 %v1076_v55, %v1484_v38  ;;  %v496_v58 = vpop.f32.mrb[5].mxu0 }
 0x11b   : > { %v582_v59 = vadd.f32 %v1100_v56, %v1484_v38  ;;  %v576_v60 = vpop.f32.mrb[5].mxu1  ;;  %v497_v61 = vadd.f32 %v1484_v38, %v496_v58 }
 0x11c   : > { %v577_v62 = vadd.f32 %v1484_v38, %v576_v60  ;;  %732 = vrot.lane.b32.xlu0 %v557_v46, %s1271_s5  ;;  %641 = vst.msk [vmem:[%s1491_s30 + $0x28] sm:$0xff] %vm635_vm1, %v502_v57 }
 0x11d   : > { %738 = vrot.lane.b32.xlu1 %v572_v51, %s1271_s5  ;;  %657 = vst.msk [vmem:[%s1491_s30 + $0xa8] sm:$0xff] %vm635_vm1, %v582_v59  ;;  %640 = vst.msk [vmem:[%s1491_s30 + $0x20] sm:$0xff] %vm635_vm1, %v497_v61  ;;  %v1079_v63 = vpop.f32.mrb[6].mxu0 }
 0x11e   : > { %656 = vst.msk [vmem:[%s1491_s30 + $0xa0] sm:$0xff] %vm635_vm1, %v577_v62  ;;  %v1103_v0 = vpop.f32.mrb[6].mxu1  ;;  %v512_v1 = vadd.f32 %v1079_v63, %v1484_v38  ;;  %v506_v2 = vpop.f32.mrb[7].mxu0 }
 0x11f   : > { %v592_v3 = vadd.f32 %v1103_v0, %v1484_v38  ;;  %v586_v4 = vpop.f32.mrb[7].mxu1  ;;  %v507_v5 = vadd.f32 %v1484_v38, %v506_v2 }
 0x120   : > { %v587_v6 = vadd.f32 %v1484_v38, %v586_v4  ;;  %736 = vrot.lane.b32.xlu0 %v567_v54, %s1271_s5  ;;  %643 = vst.msk [vmem:[%s1491_s30 + $0x38] sm:$0xff] %vm635_vm1, %v512_v1 }
 0x121   : > { %704 = vrot.lane.b32.xlu1 %v487_v53, %s1271_s5  ;;  %659 = vst.msk [vmem:[%s1491_s30 + $0xb8] sm:$0xff] %vm635_vm1, %v592_v3  ;;  %642 = vst.msk [vmem:[%s1491_s30 + $0x30] sm:$0xff] %vm635_vm1, %v507_v5  ;;  %v1082_v7 = vpop.f32.mrb[8].mxu0 }
 0x122   : > { %658 = vst.msk [vmem:[%s1491_s30 + $0xb0] sm:$0xff] %vm635_vm1, %v587_v6  ;;  %v1106_v8 = vpop.f32.mrb[8].mxu1  ;;  %v522_v9 = vadd.f32 %v1082_v7, %v1484_v38  ;;  %v516_v10 = vpop.f32.mrb[9].mxu0 }
 0x123   : > { %v602_v11 = vadd.f32 %v1106_v8, %v1484_v38  ;;  %v596_v12 = vpop.f32.mrb[9].mxu1  ;;  %v517_v13 = vadd.f32 %v1484_v38, %v516_v10 }
 0x124   : > { %v597_v14 = vadd.f32 %v1484_v38, %v596_v12  ;;  %708 = vrot.lane.b32.xlu0 %v497_v61, %s1271_s5  ;;  %645 = vst.msk [vmem:[%s1491_s30 + $0x48] sm:$0xff] %vm635_vm1, %v522_v9 }
 0x125   : > { %710 = vrot.lane.b32.xlu1 %v502_v57, %s1271_s5  ;;  %661 = vst.msk [vmem:[%s1491_s30 + $0xc8] sm:$0xff] %vm635_vm1, %v602_v11  ;;  %644 = vst.msk [vmem:[%s1491_s30 + $0x40] sm:$0xff] %vm635_vm1, %v517_v13  ;;  %v1085_v15 = vpop.f32.mrb[10].mxu0 }
 0x126   : > { %660 = vst.msk [vmem:[%s1491_s30 + $0xc0] sm:$0xff] %vm635_vm1, %v597_v14  ;;  %v1109_v16 = vpop.f32.mrb[10].mxu1  ;;  %v532_v17 = vadd.f32 %v1085_v15, %v1484_v38  ;;  %v526_v18 = vpop.f32.mrb[11].mxu0 }
 0x127   : > { %v612_v19 = vadd.f32 %v1109_v16, %v1484_v38  ;;  %v606_v20 = vpop.f32.mrb[11].mxu1  ;;  %v527_v21 = vadd.f32 %v1484_v38, %v526_v18 }
 0x128   : > { %v607_v22 = vadd.f32 %v1484_v38, %v606_v20  ;;  %740 = vrot.lane.b32.xlu0 %v577_v62, %s1271_s5  ;;  %647 = vst.msk [vmem:[%s1491_s30 + $0x58] sm:$0xff] %vm635_vm1, %v532_v17 }
 0x129   : > { %742 = vrot.lane.b32.xlu1 %v582_v59, %s1271_s5  ;;  %663 = vst.msk [vmem:[%s1491_s30 + $0xd8] sm:$0xff] %vm635_vm1, %v612_v19  ;;  %646 = vst.msk [vmem:[%s1491_s30 + $0x50] sm:$0xff] %vm635_vm1, %v527_v21  ;;  %v1088_v23 = vpop.f32.mrb[12].mxu0 }
 0x12a   : > { %662 = vst.msk [vmem:[%s1491_s30 + $0xd0] sm:$0xff] %vm635_vm1, %v607_v22  ;;  %v1112_v24 = vpop.f32.mrb[12].mxu1  ;;  %v542_v25 = vadd.f32 %v1088_v23, %v1484_v38  ;;  %v536_v26 = vpop.f32.mrb[13].mxu0 }
 0x12b   : > { %v622_v27 = vadd.f32 %v1112_v24, %v1484_v38  ;;  %v616_v28 = vpop.f32.mrb[13].mxu1  ;;  %v537_v29 = vadd.f32 %v1484_v38, %v536_v26 }
 0x12c   : > { %v617_v30 = vadd.f32 %v1484_v38, %v616_v28  ;;  %712 = vrot.lane.b32.xlu0 %v507_v5, %s1271_s5  ;;  %649 = vst.msk [vmem:[%s1491_s30 + $0x68] sm:$0xff] %vm635_vm1, %v542_v25 }
 0x12d   : > { %714 = vrot.lane.b32.xlu1 %v512_v1, %s1271_s5  ;;  %665 = vst.msk [vmem:[%s1491_s30 + $0xe8] sm:$0xff] %vm635_vm1, %v622_v27  ;;  %648 = vst.msk [vmem:[%s1491_s30 + $0x60] sm:$0xff] %vm635_vm1, %v537_v29  ;;  %v1091_v31 = vpop.f32.mrb[14].mxu0 }
 0x12e   : > { %664 = vst.msk [vmem:[%s1491_s30 + $0xe0] sm:$0xff] %vm635_vm1, %v617_v30  ;;  %v1115_v32 = vpop.f32.mrb[14].mxu1  ;;  %v552_v33 = vadd.f32 %v1091_v31, %v1484_v38  ;;  %v546_v34 = vpop.f32.mrb[15].mxu0 }
 0x12f   : > { %v632_v35 = vadd.f32 %v1115_v32, %v1484_v38  ;;  %v626_v36 = vpop.f32.mrb[15].mxu1  ;;  %v547_v37 = vadd.f32 %v1484_v38, %v546_v34 }
 0x130   : > { %v627_v39 = vadd.f32 %v1484_v38, %v626_v36  ;;  %744 = vrot.lane.b32.xlu0 %v587_v6, %s1271_s5  ;;  %651 = vst.msk [vmem:[%s1491_s30 + $0x78] sm:$0xff] %vm635_vm1, %v552_v33 }
 0x131   : > { %746 = vrot.lane.b32.xlu1 %v592_v3, %s1271_s5  ;;  %667 = vst.msk [vmem:[%s1491_s30 + $0xf8] sm:$0xff] %vm635_vm1, %v632_v35  ;;  %650 = vst.msk [vmem:[%s1491_s30 + $0x70] sm:$0xff] %vm635_vm1, %v547_v37 }
 0x132   : > { %666 = vst.msk [vmem:[%s1491_s30 + $0xf0] sm:$0xff] %vm635_vm1, %v627_v39 }
 0x134   : > { %716 = vrot.lane.b32.xlu0 %v517_v13, %s1271_s5 }
 0x135   : > { %718 = vrot.lane.b32.xlu1 %v522_v9, %s1271_s5 }
 0x138   : > { %748 = vrot.lane.b32.xlu0 %v597_v14, %s1271_s5 }
 0x139   : > { %750 = vrot.lane.b32.xlu1 %v602_v11, %s1271_s5 }
 0x13c   : > { %720 = vrot.lane.b32.xlu0 %v527_v21, %s1271_s5 }
 0x13d   : > { %722 = vrot.lane.b32.xlu1 %v532_v17, %s1271_s5 }
 0x140   : > { %752 = vrot.lane.b32.xlu0 %v607_v22, %s1271_s5 }
 0x141   : > { %754 = vrot.lane.b32.xlu1 %v612_v19, %s1271_s5 }
 0x144   : > { %724 = vrot.lane.b32.xlu0 %v537_v29, %s1271_s5 }
 0x145   : > { %726 = vrot.lane.b32.xlu1 %v542_v25, %s1271_s5 }
 0x148   : > { %756 = vrot.lane.b32.xlu0 %v617_v30, %s1271_s5 }
 0x149   : > { %758 = vrot.lane.b32.xlu1 %v622_v27, %s1271_s5 }
 0x14c   : > { %728 = vrot.lane.b32.xlu0 %v547_v37, %s1271_s5 }
 0x14d   : > { %730 = vrot.lane.b32.xlu1 %v552_v33, %s1271_s5 }
 0x150   : > { %760 = vrot.lane.b32.xlu0 %v627_v39, %s1271_s5 }
 0x151   : > { %762 = vrot.lane.b32.xlu1 %v632_v35, %s1271_s5 }
 0x186   : > { %v703_v40 = vpop.permute.xlu0 %702 }
 0x187   : > { %v735_v38 = vpop.permute.xlu1 %734  ;;  %797 = vst.msk [vmem:[%s1626_s12 + $0x8] sm:$0xff] %vm635_vm1, %v703_v40 }
 0x188   : > { %813 = vst.msk [vmem:[%s1626_s12 + $0x88] sm:$0xff] %vm635_vm1, %v735_v38 }
 0x18a   : > { %v701_v42 = vpop.permute.xlu0 %700 }
 0x18b   : > { %v707_v41 = vpop.permute.xlu1 %706  ;;  %796 = vst.msk [vmem:[%s1626_s12] sm:$0xff] %vm635_vm1, %v701_v42 }
 0x18c   : > { %799 = vst.msk [vmem:[%s1626_s12 + $0x18] sm:$0xff] %vm635_vm1, %v707_v41 }
 0x18e   : > { %v733_v44 = vpop.permute.xlu0 %732 }
 0x18f   : > { %v739_v43 = vpop.permute.xlu1 %738  ;;  %812 = vst.msk [vmem:[%s1626_s12 + $0x80] sm:$0xff] %vm635_vm1, %v733_v44 }
 0x190   : > { %815 = vst.msk [vmem:[%s1626_s12 + $0x98] sm:$0xff] %vm635_vm1, %v739_v43 }
 0x192   : > { %v737_v46 = vpop.permute.xlu0 %736 }
 0x193   : > { %v705_v45 = vpop.permute.xlu1 %704  ;;  %814 = vst.msk [vmem:[%s1626_s12 + $0x90] sm:$0xff] %vm635_vm1, %v737_v46 }
 0x194   : > { %798 = vst.msk [vmem:[%s1626_s12 + $0x10] sm:$0xff] %vm635_vm1, %v705_v45 }
 0x196   : > { %v709_v48 = vpop.permute.xlu0 %708 }
 0x197   : > { %v711_v47 = vpop.permute.xlu1 %710  ;;  %800 = vst.msk [vmem:[%s1626_s12 + $0x20] sm:$0xff] %vm635_vm1, %v709_v48 }
 0x198   : > { %801 = vst.msk [vmem:[%s1626_s12 + $0x28] sm:$0xff] %vm635_vm1, %v711_v47 }
 0x19a   : > { %v741_v50 = vpop.permute.xlu0 %740 }
 0x19b   : > { %v743_v49 = vpop.permute.xlu1 %742  ;;  %816 = vst.msk [vmem:[%s1626_s12 + $0xa0] sm:$0xff] %vm635_vm1, %v741_v50 }
 0x19c   : > { %817 = vst.msk [vmem:[%s1626_s12 + $0xa8] sm:$0xff] %vm635_vm1, %v743_v49 }
 0x19e   : > { %v713_v52 = vpop.permute.xlu0 %712 }
 0x19f   : > { %v715_v51 = vpop.permute.xlu1 %714  ;;  %802 = vst.msk [vmem:[%s1626_s12 + $0x30] sm:$0xff] %vm635_vm1, %v713_v52 }
 0x1a0   : > { %803 = vst.msk [vmem:[%s1626_s12 + $0x38] sm:$0xff] %vm635_vm1, %v715_v51 }
 0x1a2   : > { %v745_v54 = vpop.permute.xlu0 %744 }
 0x1a3   : > { %v747_v53 = vpop.permute.xlu1 %746  ;;  %818 = vst.msk [vmem:[%s1626_s12 + $0xb0] sm:$0xff] %vm635_vm1, %v745_v54 }
 0x1a4   : > { %819 = vst.msk [vmem:[%s1626_s12 + $0xb8] sm:$0xff] %vm635_vm1, %v747_v53 }
 0x1a6   : > { %v717_v56 = vpop.permute.xlu0 %716 }
 0x1a7   : > { %v719_v55 = vpop.permute.xlu1 %718  ;;  %804 = vst.msk [vmem:[%s1626_s12 + $0x40] sm:$0xff] %vm635_vm1, %v717_v56 }
 0x1a8   : > { %805 = vst.msk [vmem:[%s1626_s12 + $0x48] sm:$0xff] %vm635_vm1, %v719_v55 }
 0x1aa   : > { %v749_v58 = vpop.permute.xlu0 %748 }
 0x1ab   : > { %v751_v57 = vpop.permute.xlu1 %750  ;;  %820 = vst.msk [vmem:[%s1626_s12 + $0xc0] sm:$0xff] %vm635_vm1, %v749_v58 }
 0x1ac   : > { %821 = vst.msk [vmem:[%s1626_s12 + $0xc8] sm:$0xff] %vm635_vm1, %v751_v57 }
 0x1ae   : > { %v721_v60 = vpop.permute.xlu0 %720 }
 0x1af   : > { %v723_v59 = vpop.permute.xlu1 %722  ;;  %806 = vst.msk [vmem:[%s1626_s12 + $0x50] sm:$0xff] %vm635_vm1, %v721_v60 }
 0x1b0   : > { %807 = vst.msk [vmem:[%s1626_s12 + $0x58] sm:$0xff] %vm635_vm1, %v723_v59 }
 0x1b2   : > { %v753_v62 = vpop.permute.xlu0 %752 }
 0x1b3   : > { %v755_v61 = vpop.permute.xlu1 %754  ;;  %822 = vst.msk [vmem:[%s1626_s12 + $0xd0] sm:$0xff] %vm635_vm1, %v753_v62 }
 0x1b4   : > { %823 = vst.msk [vmem:[%s1626_s12 + $0xd8] sm:$0xff] %vm635_vm1, %v755_v61 }
 0x1b6   : > { %v725_v0 = vpop.permute.xlu0 %724 }
 0x1b7   : > { %v727_v63 = vpop.permute.xlu1 %726  ;;  %808 = vst.msk [vmem:[%s1626_s12 + $0x60] sm:$0xff] %vm635_vm1, %v725_v0 }
 0x1b8   : > { %809 = vst.msk [vmem:[%s1626_s12 + $0x68] sm:$0xff] %vm635_vm1, %v727_v63 }
 0x1ba   : > { %v757_v2 = vpop.permute.xlu0 %756 }
 0x1bb   : > { %v759_v1 = vpop.permute.xlu1 %758  ;;  %824 = vst.msk [vmem:[%s1626_s12 + $0xe0] sm:$0xff] %vm635_vm1, %v757_v2 }
 0x1bc   : > { %825 = vst.msk [vmem:[%s1626_s12 + $0xe8] sm:$0xff] %vm635_vm1, %v759_v1 }
 0x1be   : > { %v729_v4 = vpop.permute.xlu0 %728 }
 0x1bf   : > { %v731_v3 = vpop.permute.xlu1 %730  ;;  %810 = vst.msk [vmem:[%s1626_s12 + $0x70] sm:$0xff] %vm635_vm1, %v729_v4 }
 0x1c0   : > { %811 = vst.msk [vmem:[%s1626_s12 + $0x78] sm:$0xff] %vm635_vm1, %v731_v3 }
 0x1c2   : > { %v761_v6 = vpop.permute.xlu0 %760 }
 0x1c3   : > { %v763_v5 = vpop.permute.xlu1 %762  ;;  %826 = vst.msk [vmem:[%s1626_s12 + $0xf0] sm:$0xff] %vm635_vm1, %v761_v6 }
 0x1c4   : > { %827 = vst.msk [vmem:[%s1626_s12 + $0xf8] sm:$0xff] %vm635_vm1, %v763_v5 }
 0x1c5 PF: > { %s18_s20 = sadd.s32 1, %s1266_s20   ;;  %s1718_s15 = smov %s1250_s16 }
 0x1c6   : > { %p15_p9 = scmp.ge.s32.totalorder %s18_s20, 4   ;;  %s1719_s16 = smov %s1254_s17 }
 0x1c7   : > { %s1720_s17 = smov %s1346_s27  ;;  %s1721_s18 = smov %s1262_s19 }
 0x1c8   : > { %s1722_s19 = smov %s1724_s22  ;;  %17 = sbr.rel (!%p15_p9) target bundleno = 4 (0x4), region = 84 }
 0x1cf   :  { %883 = vsyncpa [#allocation3], 1 }
 0x1d0   :  { %885 = vsyncpa [#allocation3 + $0x1], 1 }

// kernel: sae_forward.3
= control target key start
LH: loop header
LB: loop body
LE: loop exit
PB: predicated region body
PF: predicated region fallthrough
CT: control target
= control target key end

     0   :  { %7 = vsyncpa [#allocation3], 0  ;;  %s2859_s0 = inlined_call_operand.vmem [shape: f32[2,256,4], index: 0, kind: input, shape index: {}]   ;;  %s2860_s1 = inlined_call_operand.vmem [shape: f32[2,256,4], index: 1, kind: input, shape index: {}]   ;;  %s2861_s2 = inlined_call_operand.hbm [shape: f32[2,256,256], index: 2, kind: output, shape index: {}]  }
   0x1   :  { %9 = vsyncpa [#allocation3 + $0x1], 0  ;;  %s1948_s9 = smov 0   ;;  %s1950_s10 = smov 0  }
   0x2   :  { %s1952_s11 = smov 0   ;;  %s1954_s12 = smov 0  }
   0x3   :  { %s1956_s13 = smov 0   ;;  %s1958_s14 = smov 0  }
   0x4 LB: > { %s1359_s15 = sadd.s32 4294967295, %s1928_s14   ;;  %s1360_s16 = sadd.s32 4294967294, %s1928_s14   ;;  %s1928_s14 = sphi %s1958_s14, %s15_s14   ;;  %s1924_s13 = sphi %s1956_s13, %s2942_s13   ;;  %s1920_s12 = sphi %s1954_s12, %s2941_s12   ;;  %s1916_s11 = sphi %s1952_s11, %s2940_s11   ;;  %s1912_s10 = sphi %s1950_s10, %s2939_s10   ;;  %s1908_s9 = sphi %s1948_s9, %s2938_s9  }
   0x5   : > { %s27_s17 = sadd.s32 1, %s1924_s13  ;;  %s90_s18 = sadd.s32 1, %s1916_s11 }
   0x6   : > { %p29_p0 = scmp.ge.s32.totalorder %s27_s17, 2  ;;  %p100_p1 = scmp.ne.s32.totalorder %s1916_s11, %s1912_s10 }
   0x7   : > { %p101_p2 = scmp.eq.s32.totalorder %s1359_s15, 1  ;;  %p106_p3 = scmp.ne.s32.totalorder %s1912_s10, %s1908_s9 }
   0x8   : > { %s2944_s17 = smov (%p29_p0, %s27_s17), 0  ;;  %p107_p5 = scmp.eq.s32.totalorder %s1360_s16, 1 }
   0x9   : > { %p1988_p4 = por %p101_p2, %p100_p1  ;;  %s85_s20 = ssub.s32 %s1924_s13, %s2944_s17 }
   0xa   : > { %p1363_p6 = scmp.ge.s32.totalorder %s1928_s14, 1  ;;  %p88_p7 = scmp.eq.s32.totalorder %s85_s20, 0 }
   0xb   : > { %p1995_p8 = por %p107_p5, %p106_p3  ;;  %p146_p9 = scmp.lt.s32.totalorder %s1928_s14, 3 }
   0xc   : > { %s2001_s22 = scalar_select %p88_p7, %s1916_s11, %s90_s18  }
   0xd   : > { %p147_p10 = pnand %p1363_p6, %p146_p9 }
   0xf   : > { %150 = sbr.rel (%p147_p10) target bundleno = 708 (0x2c4), region = 28 }
  0x16   : > { %p178_p11 = scmp.lt.s32.totalorder %s1920_s12, 1  ;;  %vm257_vm0 = vcmask 31744   ;;  %s174_s3 = sand.u32 1, %s1912_s10  }
  0x17   : > { %vm2012_vm1 = vmpackc.low %vm257_vm0, %vm257_vm0  ;;  %s1364_s4 = sshll.u32 %s174_s3, 9  ;;  %s1440_s6 = sshll.u32 %s1920_s12, 13 }
  0x18   : > { %s179_s23 = scalar_select %p178_p11, %s1920_s12, 1 }
  0x19   : > { %s2674_s5 = scalar_lea.vmem [#allocation2], %s1364_s4  ;;  %s2803_s16 = scalar_lea.hbm %s2861_s2, %s1440_s6 }
  0x1a   : > { %s1438_s24 = sshll.u32 %s179_s23, 8  ;;  %s1268_s7 = sshll.u32 %s2674_s5, 4  ;;  %s2805_s7 = int_to_ptr.vmem [resolvable:$true] %s1268_s7 }
  0x1b   : > { %s2008_s27 = scalar_lea.vmem %s2860_s1, %s1438_s24  ;;  %s2041_s30 = scalar_lea.vmem %s2859_s0, %s1438_s24 }
  0x1c   : > { %v241_v1 = vld [vmem:[%s2008_s27 + $0x80] sm:$0xff]  ;;  %v242_v2 = vld [vmem:[%s2008_s27 + $0x88] sm:$0xff]  ;;  %v243_v6 = vld [vmem:[%s2008_s27 + $0x90] sm:$0xff]  ;;  %s2813_s12 = scalar_lea.sflag [#allocation3], %s174_s3  ;;  %s1850_s18 = scalar_lea.vmem %s2805_s7, 8192 }
  0x1d   : > { %v225_v3 = vld [vmem:[%s2008_s27] sm:$0xff]  ;;  %v1537_v4 = vpack.c.bf16 %v242_v2, %v241_v1  ;;  %v226_v5 = vld [vmem:[%s2008_s27 + $0x8] sm:$0xff]  ;;  %v244_v7 = vld [vmem:[%s2008_s27 + $0x98] sm:$0xff]  ;;  %p1851_p12 = scmp.ne.s32.totalorder %s2805_s7, %s1850_s18  ;;  %s1930_s20 = smov [#allocation2]  }
  0x1e   : > { %v1540_v8 = vpack.c.bf16 %v226_v5, %v225_v3  ;;  %v1543_v9 = vpack.c.bf16 %v244_v7, %v243_v6  ;;  %v227_v10 = vld [vmem:[%s2008_s27 + $0x10] sm:$0xff]  ;;  %v228_v11 = vld [vmem:[%s2008_s27 + $0x18] sm:$0xff]  ;;  %v245_v12 = vld [vmem:[%s2008_s27 + $0xa0] sm:$0xff]  ;;  %s1854_s23 = sshll.u32 %s1930_s20, 4  ;;  %s1855_s23 = int_to_ptr.vmem [resolvable:$false] %s1854_s23 }
  0x1f   : > { %1539 = vmatprep.subr.msk.bf16.mxu0 %vm2012_vm1, %v1537_v4  ;;  %1585 = vmatprep.subr.msk.bf16.mxu1 %vm2012_vm1, %v1537_v4  ;;  %v246_v13 = vld [vmem:[%s2008_s27 + $0xa8] sm:$0xff]  ;;  %v1546_v14 = vpack.c.bf16 %v228_v11, %v227_v10  ;;  %v2044_v16 = vld [vmem:[%s2041_s30] sm:$0xff]  ;;  %v247_v20 = vld [vmem:[%s2008_s27 + $0xb0] sm:$0xff]  ;;  %p1852_p13 = pnand %p1851_p12, %p1988_p4  ;;  %s1856_s24 = scalar_lea.vmem %s1855_s23, 16384 }
  0x20   : > { %1542 = vmatpush3.bf16.xpose.msk.msra.mxu0 %vm2012_vm1, %v1540_v8  ;;  %1593 = vmatpush3.bf16.xpose.msk.msra.mxu1 %vm2012_vm1, %v1540_v8  ;;  %v1549_v15 = vpack.c.bf16 %v246_v13, %v245_v12  ;;  %v2049_v17 = vld [vmem:[%s2041_s30 + $0x80] sm:$0xff]  ;;  %v230_v19 = vld [vmem:[%s2008_s27 + $0x28] sm:$0xff]  ;;  %v248_v21 = vld [vmem:[%s2008_s27 + $0xb8] sm:$0xff]  ;;  %p1857_p1 = scmp.lt.s32.totalorder %s2805_s7, %s1855_s23  ;;  %p1858_p2 = scmp.lt.s32.totalorder %s1856_s24, %s1850_s18 }
  0x21   : > { %1545 = vmatprep.subr.msk.bf16.mxu0 %vm2012_vm1, %v1543_v9  ;;  %1586 = vmatprep.subr.msk.bf16.mxu1 %vm2012_vm1, %v1543_v9  ;;  %v229_v18 = vld [vmem:[%s2008_s27 + $0x20] sm:$0xff]  ;;  %v1555_v23 = vpack.c.bf16 %v248_v21, %v247_v20  ;;  %v231_v24 = vld [vmem:[%s2008_s27 + $0x30] sm:$0xff]  ;;  %v232_v25 = vld [vmem:[%s2008_s27 + $0x38] sm:$0xff]  ;;  %p1853_p0 = pneg %p1852_p13 }
  0x22   : > { %1473 = vmatprep.mubr.msk.f32.mxu0 %vm257_vm0, %v2044_v16  ;;  %1505 = vmatprep.mubr.msk.f32.mxu1 %vm257_vm0, %v2049_v17  ;;  %v1552_v22 = vpack.c.bf16 %v230_v19, %v229_v18  ;;  %v249_v26 = vld [vmem:[%s2008_s27 + $0xc0] sm:$0xff]  ;;  %v250_v27 = vld [vmem:[%s2008_s27 + $0xc8] sm:$0xff]  ;;  %v1558_v28 = vpack.c.bf16 %v232_v25, %v231_v24  ;;  %v251_v32 = vld [vmem:[%s2008_s27 + $0xd0] sm:$0xff]  ;;  %p1859_p3 = por %p1858_p2, %p1857_p1 }
  0x23   : > { %v1561_v29 = vpack.c.bf16 %v250_v27, %v249_v26  ;;  %v233_v30 = vld [vmem:[%s2008_s27 + $0x40] sm:$0xff]  ;;  %v234_v31 = vld [vmem:[%s2008_s27 + $0x48] sm:$0xff]  ;;  %v252_v33 = vld [vmem:[%s2008_s27 + $0xd8] sm:$0xff] }
  0x24   : > { %v1564_v34 = vpack.c.bf16 %v234_v31, %v233_v30  ;;  %v1567_v35 = vpack.c.bf16 %v252_v33, %v251_v32  ;;  %v235_v36 = vld [vmem:[%s2008_s27 + $0x50] sm:$0xff]  ;;  %v236_v37 = vld [vmem:[%s2008_s27 + $0x58] sm:$0xff]  ;;  %v253_v38 = vld [vmem:[%s2008_s27 + $0xe0] sm:$0xff]  ;;  %p1860_p5 = pnand %p1859_p3, %p1853_p0 }
  0x25   : > { %v254_v39 = vld [vmem:[%s2008_s27 + $0xe8] sm:$0xff]  ;;  %v1570_v40 = vpack.c.bf16 %v236_v37, %v235_v36  ;;  %v237_v42 = vld [vmem:[%s2008_s27 + $0x60] sm:$0xff]  ;;  %v255_v44 = vld [vmem:[%s2008_s27 + $0xf0] sm:$0xff] }
  0x26   : > { %v1573_v41 = vpack.c.bf16 %v254_v39, %v253_v38  ;;  %v238_v43 = vld [vmem:[%s2008_s27 + $0x68] sm:$0xff]  ;;  %v256_v45 = vld [vmem:[%s2008_s27 + $0xf8] sm:$0xff]  ;;  %v239_v48 = vld [vmem:[%s2008_s27 + $0x70] sm:$0xff] }
  0x27   : > { %v1576_v46 = vpack.c.bf16 %v238_v43, %v237_v42  ;;  %v1579_v47 = vpack.c.bf16 %v256_v45, %v255_v44  ;;  %v240_v49 = vld [vmem:[%s2008_s27 + $0x78] sm:$0xff]  ;;  %v194_v51 = vld [vmem:[%s2041_s30 + $0x8] sm:$0xff]  ;;  %v195_v53 = vld [vmem:[%s2041_s30 + $0x10] sm:$0xff] }
  0x28   : > { %1548 = vmatpush3.bf16.xpose.msk.msra.mxu0 %vm2012_vm1, %v1546_v14  ;;  %1594 = vmatpush3.bf16.xpose.msk.msra.mxu1 %vm2012_vm1, %v1546_v14  ;;  %v1582_v50 = vpack.c.bf16 %v240_v49, %v239_v48  ;;  %v210_v52 = vld [vmem:[%s2041_s30 + $0x88] sm:$0xff]  ;;  %v211_v54 = vld [vmem:[%s2041_s30 + $0x90] sm:$0xff]  ;;  %v196_v55 = vld [vmem:[%s2041_s30 + $0x18] sm:$0xff] }
  0x29   : > { %1551 = vmatprep.subr.msk.bf16.mxu0 %vm2012_vm1, %v1549_v15  ;;  %1587 = vmatprep.subr.msk.bf16.mxu1 %vm2012_vm1, %v1549_v15  ;;  %v212_v56 = vld [vmem:[%s2041_s30 + $0x98] sm:$0xff]  ;;  %v197_v57 = vld [vmem:[%s2041_s30 + $0x20] sm:$0xff]  ;;  %v198_v59 = vld [vmem:[%s2041_s30 + $0x28] sm:$0xff] }
  0x2a   : > { %v213_v58 = vld [vmem:[%s2041_s30 + $0xa0] sm:$0xff]  ;;  %v214_v60 = vld [vmem:[%s2041_s30 + $0xa8] sm:$0xff]  ;;  %v199_v61 = vld [vmem:[%s2041_s30 + $0x30] sm:$0xff] }
  0x2b   : > { %v215_v62 = vld [vmem:[%s2041_s30 + $0xb0] sm:$0xff]  ;;  %v200_v63 = vld [vmem:[%s2041_s30 + $0x38] sm:$0xff]  ;;  %v201_v1 = vld [vmem:[%s2041_s30 + $0x40] sm:$0xff] }
  0x2c   : > { %v216_v0 = vld [vmem:[%s2041_s30 + $0xb8] sm:$0xff]  ;;  %v217_v2 = vld [vmem:[%s2041_s30 + $0xc0] sm:$0xff]  ;;  %v202_v3 = vld [vmem:[%s2041_s30 + $0x48] sm:$0xff] }
  0x2d   : > { %v218_v4 = vld [vmem:[%s2041_s30 + $0xc8] sm:$0xff]  ;;  %v203_v5 = vld [vmem:[%s2041_s30 + $0x50] sm:$0xff]  ;;  %v204_v7 = vld [vmem:[%s2041_s30 + $0x58] sm:$0xff] }
  0x2e   : > { %v219_v6 = vld [vmem:[%s2041_s30 + $0xd0] sm:$0xff]  ;;  %v220_v8 = vld [vmem:[%s2041_s30 + $0xd8] sm:$0xff]  ;;  %v205_v9 = vld [vmem:[%s2041_s30 + $0x60] sm:$0xff] }
  0x2f   : > { %v221_v10 = vld [vmem:[%s2041_s30 + $0xe0] sm:$0xff]  ;;  %v206_v11 = vld [vmem:[%s2041_s30 + $0x68] sm:$0xff]  ;;  %v207_v13 = vld [vmem:[%s2041_s30 + $0x70] sm:$0xff] }
  0x30   : > { %1554 = vmatpush3.bf16.xpose.msk.msra.mxu0 %vm2012_vm1, %v1552_v22  ;;  %1595 = vmatpush3.bf16.xpose.msk.msra.mxu1 %vm2012_vm1, %v1552_v22  ;;  %v222_v12 = vld [vmem:[%s2041_s30 + $0xe8] sm:$0xff]  ;;  %v223_v14 = vld [vmem:[%s2041_s30 + $0xf0] sm:$0xff]  ;;  %v208_v15 = vld [vmem:[%s2041_s30 + $0x78] sm:$0xff] }
  0x31   : > { %1557 = vmatprep.subr.msk.bf16.mxu0 %vm2012_vm1, %v1555_v23  ;;  %1588 = vmatprep.subr.msk.bf16.mxu1 %vm2012_vm1, %v1555_v23 }
  0x38   : > { %1560 = vmatpush3.bf16.xpose.msk.msra.mxu0 %vm2012_vm1, %v1558_v28  ;;  %1596 = vmatpush3.bf16.xpose.msk.msra.mxu1 %vm2012_vm1, %v1558_v28 }
  0x39   : > { %1563 = vmatprep.subr.msk.bf16.mxu0 %vm2012_vm1, %v1561_v29  ;;  %1589 = vmatprep.subr.msk.bf16.mxu1 %vm2012_vm1, %v1561_v29 }
  0x40   : > { %1566 = vmatpush3.bf16.xpose.msk.msra.mxu0 %vm2012_vm1, %v1564_v34  ;;  %1597 = vmatpush3.bf16.xpose.msk.msra.mxu1 %vm2012_vm1, %v1564_v34 }
  0x41   : > { %1569 = vmatprep.subr.msk.bf16.mxu0 %vm2012_vm1, %v1567_v35  ;;  %1590 = vmatprep.subr.msk.bf16.mxu1 %vm2012_vm1, %v1567_v35 }
  0x48   : > { %1572 = vmatpush3.bf16.xpose.msk.msra.mxu0 %vm2012_vm1, %v1570_v40  ;;  %1598 = vmatpush3.bf16.xpose.msk.msra.mxu1 %vm2012_vm1, %v1570_v40 }
  0x49   : > { %1575 = vmatprep.subr.msk.bf16.mxu0 %vm2012_vm1, %v1573_v41  ;;  %1591 = vmatprep.subr.msk.bf16.mxu1 %vm2012_vm1, %v1573_v41 }
  0x50   : > { %1578 = vmatpush3.bf16.xpose.msk.msra.mxu0 %vm2012_vm1, %v1576_v46  ;;  %1599 = vmatpush3.bf16.xpose.msk.msra.mxu1 %vm2012_vm1, %v1576_v46 }
  0x51   : > { %1581 = vmatprep.subr.msk.bf16.mxu0 %vm2012_vm1, %v1579_v47  ;;  %1592 = vmatprep.subr.msk.bf16.mxu1 %vm2012_vm1, %v1579_v47 }
  0x58   : > { %1584 = vmatpush3.bf16.xpose.msk.msra.mxu0 %vm2012_vm1, %v1582_v50  ;;  %1600 = vmatpush3.bf16.xpose.msk.msra.mxu1 %vm2012_vm1, %v1582_v50 }
  0x5f   : > { %1474 = vmatmul.mubr.msk.f32.vlgmr.msra.gmra.mrb[0].mxu0 %vm257_vm0, %v2044_v16  ;;  %1506 = vmatmul.mubr.msk.f32.vlgmr.msra.gmra.mrb[0].mxu1 %vm257_vm0, %v2049_v17  ;;  %v224_v16 = vld [vmem:[%s2041_s30 + $0xf8] sm:$0xff] }
  0x60   : > { %1475 = vmatprep.mubr.msk.f32.mxu0 %vm257_vm0, %v194_v51  ;;  %1507 = vmatprep.mubr.msk.f32.mxu1 %vm257_vm0, %v210_v52 }
  0x63   : > { %1476 = vmatmul.mubr.msk.f32.gmra.mrb[2].mxu0 %vm257_vm0, %v194_v51  ;;  %1508 = vmatmul.mubr.msk.f32.gmra.mrb[2].mxu1 %vm257_vm0, %v210_v52 }
  0x64   : > { %1477 = vmatprep.mubr.msk.f32.mxu0 %vm257_vm0, %v195_v53  ;;  %1509 = vmatprep.mubr.msk.f32.mxu1 %vm257_vm0, %v211_v54 }
  0x67   : > { %1478 = vmatmul.mubr.msk.f32.gmra.mrb[4].mxu0 %vm257_vm0, %v195_v53  ;;  %1510 = vmatmul.mubr.msk.f32.gmra.mrb[4].mxu1 %vm257_vm0, %v211_v54 }
  0x68   : > { %1479 = vmatprep.mubr.msk.f32.mxu0 %vm257_vm0, %v196_v55  ;;  %1511 = vmatprep.mubr.msk.f32.mxu1 %vm257_vm0, %v212_v56 }
  0x6b   : > { %1480 = vmatmul.mubr.msk.f32.gmra.mrb[6].mxu0 %vm257_vm0, %v196_v55  ;;  %1512 = vmatmul.mubr.msk.f32.gmra.mrb[6].mxu1 %vm257_vm0, %v212_v56 }
  0x6c   : > { %1481 = vmatprep.mubr.msk.f32.mxu0 %vm257_vm0, %v197_v57  ;;  %1513 = vmatprep.mubr.msk.f32.mxu1 %vm257_vm0, %v213_v58 }
  0x6f   : > { %1482 = vmatmul.mubr.msk.f32.gmra.mrb[8].mxu0 %vm257_vm0, %v197_v57  ;;  %1514 = vmatmul.mubr.msk.f32.gmra.mrb[8].mxu1 %vm257_vm0, %v213_v58 }
  0x70   : > { %1483 = vmatprep.mubr.msk.f32.mxu0 %vm257_vm0, %v198_v59  ;;  %1515 = vmatprep.mubr.msk.f32.mxu1 %vm257_vm0, %v214_v60 }
  0x73   : > { %1484 = vmatmul.mubr.msk.f32.gmra.mrb[10].mxu0 %vm257_vm0, %v198_v59  ;;  %1516 = vmatmul.mubr.msk.f32.gmra.mrb[10].mxu1 %vm257_vm0, %v214_v60 }
  0x74   : > { %1485 = vmatprep.mubr.msk.f32.mxu0 %vm257_vm0, %v199_v61  ;;  %1517 = vmatprep.mubr.msk.f32.mxu1 %vm257_vm0, %v215_v62 }
  0x77   : > { %1486 = vmatmul.mubr.msk.f32.gmra.mrb[12].mxu0 %vm257_vm0, %v199_v61  ;;  %1518 = vmatmul.mubr.msk.f32.gmra.mrb[12].mxu1 %vm257_vm0, %v215_v62 }
  0x78   : > { %1487 = vmatprep.mubr.msk.f32.mxu0 %vm257_vm0, %v200_v63  ;;  %1519 = vmatprep.mubr.msk.f32.mxu1 %vm257_vm0, %v216_v0 }
  0x7b   : > { %1488 = vmatmul.mubr.msk.f32.gmra.mrb[14].mxu0 %vm257_vm0, %v200_v63  ;;  %1520 = vmatmul.mubr.msk.f32.gmra.mrb[14].mxu1 %vm257_vm0, %v216_v0 }
  0x7c   : > { %1489 = vmatprep.mubr.msk.f32.mxu0 %vm257_vm0, %v201_v1  ;;  %1521 = vmatprep.mubr.msk.f32.mxu1 %vm257_vm0, %v217_v2 }
  0x7f   : > { %1490 = vmatmul.mubr.msk.f32.gmra.mrb[16].mxu0 %vm257_vm0, %v201_v1  ;;  %1522 = vmatmul.mubr.msk.f32.gmra.mrb[16].mxu1 %vm257_vm0, %v217_v2 }
  0x80   : > { %1491 = vmatprep.mubr.msk.f32.mxu0 %vm257_vm0, %v202_v3  ;;  %1523 = vmatprep.mubr.msk.f32.mxu1 %vm257_vm0, %v218_v4 }
  0x83   : > { %1492 = vmatmul.mubr.msk.f32.gmra.mrb[18].mxu0 %vm257_vm0, %v202_v3  ;;  %1524 = vmatmul.mubr.msk.f32.gmra.mrb[18].mxu1 %vm257_vm0, %v218_v4 }
  0x84   : > { %1493 = vmatprep.mubr.msk.f32.mxu0 %vm257_vm0, %v203_v5  ;;  %1525 = vmatprep.mubr.msk.f32.mxu1 %vm257_vm0, %v219_v6 }
  0x87   : > { %1494 = vmatmul.mubr.msk.f32.gmra.mrb[20].mxu0 %vm257_vm0, %v203_v5  ;;  %1526 = vmatmul.mubr.msk.f32.gmra.mrb[20].mxu1 %vm257_vm0, %v219_v6 }
  0x88   : > { %1495 = vmatprep.mubr.msk.f32.mxu0 %vm257_vm0, %v204_v7  ;;  %1527 = vmatprep.mubr.msk.f32.mxu1 %vm257_vm0, %v220_v8 }
  0x8b   : > { %1496 = vmatmul.mubr.msk.f32.gmra.mrb[22].mxu0 %vm257_vm0, %v204_v7  ;;  %1528 = vmatmul.mubr.msk.f32.gmra.mrb[22].mxu1 %vm257_vm0, %v220_v8 }
  0x8c   : > { %1497 = vmatprep.mubr.msk.f32.mxu0 %vm257_vm0, %v205_v9  ;;  %1529 = vmatprep.mubr.msk.f32.mxu1 %vm257_vm0, %v221_v10 }
  0x8f   : > { %1498 = vmatmul.mubr.msk.f32.gmra.mrb[24].mxu0 %vm257_vm0, %v205_v9  ;;  %1530 = vmatmul.mubr.msk.f32.gmra.mrb[24].mxu1 %vm257_vm0, %v221_v10 }
  0x90   : > { %1499 = vmatprep.mubr.msk.f32.mxu0 %vm257_vm0, %v206_v11  ;;  %1531 = vmatprep.mubr.msk.f32.mxu1 %vm257_vm0, %v222_v12 }
  0x93   : > { %1500 = vmatmul.mubr.msk.f32.gmra.mrb[26].mxu0 %vm257_vm0, %v206_v11  ;;  %1532 = vmatmul.mubr.msk.f32.gmra.mrb[26].mxu1 %vm257_vm0, %v222_v12 }
  0x94   : > { %1501 = vmatprep.mubr.msk.f32.mxu0 %vm257_vm0, %v207_v13  ;;  %1533 = vmatprep.mubr.msk.f32.mxu1 %vm257_vm0, %v223_v14 }
  0x97   : > { %1502 = vmatmul.mubr.msk.f32.gmra.mrb[28].mxu0 %vm257_vm0, %v207_v13  ;;  %1534 = vmatmul.mubr.msk.f32.gmra.mrb[28].mxu1 %vm257_vm0, %v223_v14 }
  0x98   : > { %1503 = vmatprep.mubr.msk.f32.mxu0 %vm257_vm0, %v208_v15  ;;  %1535 = vmatprep.mubr.msk.f32.mxu1 %vm257_vm0, %v224_v16 }
  0x9b   : > { %1504 = vmatmul.mubr.msk.f32.gmra.mrb[30].mxu0 %vm257_vm0, %v208_v15  ;;  %1536 = vmatmul.mubr.msk.f32.gmra.mrb[30].mxu1 %vm257_vm0, %v224_v16 }
 0x132   : > { %v2221_v17 = vpop.f32.mrb[0].mxu0  ;;  %v2223_v18 = vpop.f32.mrb[0].mxu1 }
 0x133   : > { %v2225_v19 = vpop.f32.mrb[1].mxu0  ;;  %v2227_v20 = vpop.f32.mrb[1].mxu1 }
 0x134   : > { %v707_v21 = vmax.f32 %v2221_v17, %v2225_v19  ;;  %v755_v22 = vmax.f32 %v2223_v18, %v2227_v20 }
 0x136   : > { %v2233_v23 = vpop.f32.mrb[2].mxu1  ;;  %708 = vmax.xlane.f32.xlu0 %v707_v21  ;;  %v2235_v24 = vpop.f32.mrb[2].mxu0 }
 0x137   : > { %v2237_v25 = vpop.f32.mrb[3].mxu1  ;;  %v2239_v26 = vpop.f32.mrb[3].mxu0 }
 0x138   : > { %v758_v27 = vmax.f32 %v2233_v23, %v2237_v25  ;;  %v710_v28 = vmax.f32 %v2235_v24, %v2239_v26 }
 0x13a   : > { %759 = vmax.xlane.f32.xlu1 %v758_v27  ;;  %756 = vmax.xlane.f32.xlu0 %v755_v22  ;;  %v2245_v29 = vpop.f32.mrb[4].mxu0  ;;  %v2247_v30 = vpop.f32.mrb[4].mxu1 }
 0x13b   : > { %v2249_v31 = vpop.f32.mrb[5].mxu0  ;;  %v2251_v32 = vpop.f32.mrb[5].mxu1 }
 0x13c   : > { %v713_v33 = vmax.f32 %v2245_v29, %v2249_v31  ;;  %v761_v34 = vmax.f32 %v2247_v30, %v2251_v32 }
 0x13e   : > { %711 = vmax.xlane.f32.xlu0 %v710_v28  ;;  %714 = vmax.xlane.f32.xlu1 %v713_v33  ;;  %v2257_v35 = vpop.f32.mrb[6].mxu0  ;;  %v2259_v36 = vpop.f32.mrb[6].mxu1 }
 0x13f   : > { %v2261_v37 = vpop.f32.mrb[7].mxu0  ;;  %v2263_v38 = vpop.f32.mrb[7].mxu1 }
 0x140   : > { %v716_v39 = vmax.f32 %v2257_v35, %v2261_v37  ;;  %v764_v40 = vmax.f32 %v2259_v36, %v2263_v38 }
 0x142   : > { %762 = vmax.xlane.f32.xlu0 %v761_v34  ;;  %717 = vmax.xlane.f32.xlu1 %v716_v39  ;;  %v2269_v41 = vpop.f32.mrb[8].mxu0  ;;  %v2271_v42 = vpop.f32.mrb[8].mxu1 }
 0x143   : > { %v2273_v43 = vpop.f32.mrb[9].mxu0  ;;  %v2275_v44 = vpop.f32.mrb[9].mxu1 }
 0x144   : > { %v719_v45 = vmax.f32 %v2269_v41, %v2273_v43  ;;  %v767_v46 = vmax.f32 %v2271_v42, %v2275_v44 }
 0x146   : > { %765 = vmax.xlane.f32.xlu1 %v764_v40  ;;  %720 = vmax.xlane.f32.xlu0 %v719_v45  ;;  %v2281_v47 = vpop.f32.mrb[10].mxu0  ;;  %v2283_v48 = vpop.f32.mrb[10].mxu1 }
 0x147   : > { %v2285_v49 = vpop.f32.mrb[11].mxu0  ;;  %v2287_v50 = vpop.f32.mrb[11].mxu1 }
 0x148   : > { %v722_v51 = vmax.f32 %v2281_v47, %v2285_v49  ;;  %v770_v52 = vmax.f32 %v2283_v48, %v2287_v50 }
 0x14a   : > { %768 = vmax.xlane.f32.xlu0 %v767_v46  ;;  %723 = vmax.xlane.f32.xlu1 %v722_v51  ;;  %v2293_v53 = vpop.f32.mrb[12].mxu0  ;;  %v2295_v54 = vpop.f32.mrb[12].mxu1 }
 0x14b   : > { %v2297_v55 = vpop.f32.mrb[13].mxu0  ;;  %v2299_v56 = vpop.f32.mrb[13].mxu1 }
 0x14c   : > { %v725_v57 = vmax.f32 %v2293_v53, %v2297_v55  ;;  %v773_v58 = vmax.f32 %v2295_v54, %v2299_v56 }
 0x14e   : > { %771 = vmax.xlane.f32.xlu1 %v770_v52  ;;  %726 = vmax.xlane.f32.xlu0 %v725_v57  ;;  %v2305_v59 = vpop.f32.mrb[14].mxu0  ;;  %v2307_v60 = vpop.f32.mrb[14].mxu1 }
 0x14f   : > { %v2309_v61 = vpop.f32.mrb[15].mxu0  ;;  %v2311_v62 = vpop.f32.mrb[15].mxu1 }
 0x150   : > { %v728_v63 = vmax.f32 %v2305_v59, %v2309_v61  ;;  %v776_v0 = vmax.f32 %v2307_v60, %v2311_v62 }
 0x152   : > { %774 = vmax.xlane.f32.xlu0 %v773_v58  ;;  %729 = vmax.xlane.f32.xlu1 %v728_v63  ;;  %v2317_v1 = vpop.f32.mrb[16].mxu0  ;;  %v2319_v2 = vpop.f32.mrb[16].mxu1 }
 0x153   : > { %v2321_v3 = vpop.f32.mrb[17].mxu0  ;;  %v2323_v4 = vpop.f32.mrb[17].mxu1 }
 0x154   : > { %v731_v5 = vmax.f32 %v2317_v1, %v2321_v3  ;;  %v779_v6 = vmax.f32 %v2319_v2, %v2323_v4 }
 0x156   : > { %777 = vmax.xlane.f32.xlu1 %v776_v0  ;;  %732 = vmax.xlane.f32.xlu0 %v731_v5  ;;  %v2329_v7 = vpop.f32.mrb[18].mxu0  ;;  %v2331_v8 = vpop.f32.mrb[18].mxu1 }
 0x157   : > { %v2333_v9 = vpop.f32.mrb[19].mxu0  ;;  %v2335_v10 = vpop.f32.mrb[19].mxu1 }
 0x158   : > { %v734_v11 = vmax.f32 %v2329_v7, %v2333_v9  ;;  %v782_v12 = vmax.f32 %v2331_v8, %v2335_v10 }
 0x15a   : > { %780 = vmax.xlane.f32.xlu0 %v779_v6  ;;  %735 = vmax.xlane.f32.xlu1 %v734_v11  ;;  %v2341_v13 = vpop.f32.mrb[20].mxu0  ;;  %v2343_v14 = vpop.f32.mrb[20].mxu1 }
 0x15b   : > { %v2345_v15 = vpop.f32.mrb[21].mxu0  ;;  %v2347_v16 = vpop.f32.mrb[21].mxu1 }
 0x15c   : > { %v737_v21 = vmax.f32 %v2341_v13, %v2345_v15  ;;  %v785_v22 = vmax.f32 %v2343_v14, %v2347_v16 }
 0x15e   : > { %783 = vmax.xlane.f32.xlu1 %v782_v12  ;;  %738 = vmax.xlane.f32.xlu0 %v737_v21  ;;  %v2353_v27 = vpop.f32.mrb[22].mxu0  ;;  %v2355_v28 = vpop.f32.mrb[22].mxu1 }
 0x15f   : > { %v2357_v33 = vpop.f32.mrb[23].mxu0  ;;  %v2359_v34 = vpop.f32.mrb[23].mxu1 }
 0x160   : > { %v740_v39 = vmax.f32 %v2353_v27, %v2357_v33  ;;  %v788_v40 = vmax.f32 %v2355_v28, %v2359_v34 }
 0x162   : > { %786 = vmax.xlane.f32.xlu0 %v785_v22  ;;  %741 = vmax.xlane.f32.xlu1 %v740_v39  ;;  %v2365_v45 = vpop.f32.mrb[24].mxu0  ;;  %v2367_v46 = vpop.f32.mrb[24].mxu1 }
 0x163   : > { %2890 = vst [vmem:[#allocation5_spill] sm:$0xff] %v2367_v46  ;;  %v2369_v51 = vpop.f32.mrb[25].mxu0  ;;  %v2371_v52 = vpop.f32.mrb[25].mxu1 }
 0x164   : > { %2891 = vst [vmem:[#allocation6_spill] sm:$0xff] %v2369_v51  ;;  %2892 = vst [vmem:[#allocation7_spill] sm:$0xff] %v2371_v52  ;;  %v743_v57 = vmax.f32 %v2365_v45, %v2369_v51  ;;  %v791_v58 = vmax.f32 %v2367_v46, %v2371_v52 }
 0x166   : > { %789 = vmax.xlane.f32.xlu1 %v788_v40  ;;  %744 = vmax.xlane.f32.xlu0 %v743_v57  ;;  %v2377_v63 = vpop.f32.mrb[26].mxu0  ;;  %v2379_v0 = vpop.f32.mrb[26].mxu1 }
 0x167   : > { %2893 = vst [vmem:[#allocation8_spill] sm:$0xff] %v2377_v63  ;;  %2894 = vst [vmem:[#allocation9_spill] sm:$0xff] %v2379_v0  ;;  %v2381_v5 = vpop.f32.mrb[27].mxu0  ;;  %v2383_v6 = vpop.f32.mrb[27].mxu1 }
 0x168   : > { %2895 = vst [vmem:[#allocation10_spill] sm:$0xff] %v2381_v5  ;;  %2896 = vst [vmem:[#allocation11_spill] sm:$0xff] %v2383_v6  ;;  %v746_v11 = vmax.f32 %v2377_v63, %v2381_v5  ;;  %v794_v12 = vmax.f32 %v2379_v0, %v2383_v6 }
 0x16a   : > { %792 = vmax.xlane.f32.xlu0 %v791_v58  ;;  %747 = vmax.xlane.f32.xlu1 %v746_v11  ;;  %v2389_v21 = vpop.f32.mrb[28].mxu0  ;;  %v2391_v22 = vpop.f32.mrb[28].mxu1 }
 0x16b   : > { %2897 = vst [vmem:[#allocation12_spill] sm:$0xff] %v2389_v21  ;;  %2898 = vst [vmem:[#allocation13_spill] sm:$0xff] %v2391_v22  ;;  %v2393_v39 = vpop.f32.mrb[29].mxu0  ;;  %v2395_v40 = vpop.f32.mrb[29].mxu1 }
 0x16c   : > { %2899 = vst [vmem:[#allocation14_spill] sm:$0xff] %v2393_v39  ;;  %2900 = vst [vmem:[#allocation15_spill] sm:$0xff] %v2395_v40  ;;  %v749_v57 = vmax.f32 %v2389_v21, %v2393_v39  ;;  %v797_v52 = vmax.f32 %v2391_v22, %v2395_v40 }
 0x16e   : > { %795 = vmax.xlane.f32.xlu1 %v794_v12  ;;  %750 = vmax.xlane.f32.xlu0 %v749_v57  ;;  %v2401_v5 = vpop.f32.mrb[30].mxu0  ;;  %v2403_v58 = vpop.f32.mrb[30].mxu1 }
 0x16f   : > { %2901 = vst [vmem:[#allocation16_spill] sm:$0xff] %v2401_v5  ;;  %2902 = vst [vmem:[#allocation17_spill] sm:$0xff] %v2403_v58  ;;  %v2405_v11 = vpop.f32.mrb[31].mxu0  ;;  %v2407_v6 = vpop.f32.mrb[31].mxu1 }
 0x170   : > { %2903 = vst [vmem:[#allocation18_spill] sm:$0xff] %v2405_v11  ;;  %2904 = vst [vmem:[#allocation19_spill] sm:$0xff] %v2407_v6  ;;  %v752_v0 = vmax.f32 %v2401_v5, %v2405_v11  ;;  %v800_v63 = vmax.f32 %v2403_v58, %v2407_v6 }
 0x172   : > { %798 = vmax.xlane.f32.xlu0 %v797_v52  ;;  %753 = vmax.xlane.f32.xlu1 %v752_v0 }
 0x176   : > { %801 = vmax.xlane.f32.xlu1 %v800_v63 }
 0x1c3   : > { %v709_v40 = vpop.xlane.xlu0 %708 }
 0x1c4   : > { %v803_v12 = vsub.f32 %v2221_v17, %v709_v40  ;;  %v804_v57 = vsub.f32 %v2225_v19, %v709_v40 }
 0x1c6   : > { %v867_v22 = vmul.f32 1.442695, %v803_v12  ;;  %v869_v39 = vmul.f32 1.442695, %v804_v57 }
 0x1c7   : > { %v760_v21 = vpop.xlane.xlu1 %759  ;;  %v757_v46 = vpop.xlane.xlu0 %756 }
 0x1c8   : > { %1658 = vpow2.f32 %v867_v22  ;;  %v837_v51 = vsub.f32 %v2233_v23, %v760_v21  ;;  %v838_v11 = vsub.f32 %v2237_v25, %v760_v21  ;;  %v835_v5 = vsub.f32 %v2223_v18, %v757_v46 }
 0x1c9   : > { %1660 = vpow2.f32 %v869_v39  ;;  %v836_v52 = vsub.f32 %v2227_v20, %v757_v46 }
 0x1ca   : > { %v935_v63 = vmul.f32 1.442695, %v837_v51  ;;  %v937_v0 = vmul.f32 1.442695, %v838_v11  ;;  %v931_v6 = vmul.f32 1.442695, %v835_v5 }
 0x1cb   : > { %v933_v17 = vmul.f32 1.442695, %v836_v52  ;;  %v712_v58 = vpop.xlane.xlu0 %711  ;;  %v715_v19 = vpop.xlane.xlu1 %714 }
 0x1cc   : > { %1662 = vpow2.f32 %v935_v63  ;;  %v805_v40 = vsub.f32 %v2235_v24, %v712_v58  ;;  %v806_v22 = vsub.f32 %v2239_v26, %v712_v58  ;;  %v807_v23 = vsub.f32 %v2245_v29, %v715_v19 }
 0x1cd   : > { %1664 = vpow2.f32 %v937_v0  ;;  %v808_v25 = vsub.f32 %v2249_v31, %v715_v19 }
 0x1ce   : > { %1666 = vpow2.f32 %v931_v6  ;;  %v871_v18 = vmul.f32 1.442695, %v805_v40  ;;  %v873_v21 = vmul.f32 1.442695, %v806_v22  ;;  %v875_v20 = vmul.f32 1.442695, %v807_v23 }
 0x1cf   : > { %1668 = vpow2.f32 %v933_v17  ;;  %v877_v46 = vmul.f32 1.442695, %v808_v25  ;;  %v763_v51 = vpop.xlane.xlu0 %762  ;;  %v718_v5 = vpop.xlane.xlu1 %717 }
 0x1d0   : > { %1670 = vpow2.f32 %v871_v18  ;;  %v839_v39 = vsub.f32 %v2247_v30, %v763_v51  ;;  %v840_v24 = vsub.f32 %v2251_v32, %v763_v51  ;;  %v809_v26 = vsub.f32 %v2257_v35, %v718_v5 }
 0x1d1   : > { %1672 = vpow2.f32 %v873_v21  ;;  %v810_v29 = vsub.f32 %v2261_v37, %v718_v5 }
 0x1d2   : > { %v2427_v58 = vpop.eup %1658  ;;  %1674 = vpow2.f32 %v875_v20  ;;  %v939_v31 = vmul.f32 1.442695, %v839_v39  ;;  %v941_v6 = vmul.f32 1.442695, %v840_v24  ;;  %v879_v11 = vmul.f32 1.442695, %v809_v26 }
 0x1d3   : > { %v2429_v12 = vpop.eup %1660  ;;  %1676 = vpow2.f32 %v877_v46  ;;  %v881_v57 = vmul.f32 1.442695, %v810_v29  ;;  %v766_v52 = vpop.xlane.xlu1 %765 }
 0x1d4   : > { %v721_v63 = vpop.xlane.xlu0 %720  ;;  %1678 = vpow2.f32 %v939_v31  ;;  %v841_v30 = vsub.f32 %v2259_v36, %v766_v52  ;;  %v842_v32 = vsub.f32 %v2263_v38, %v766_v52  ;;  %v995_v0 = vadd.f32 %v2429_v12, %v2427_v58 }
 0x1d5   : > { %v811_v35 = vsub.f32 %v2269_v41, %v721_v63  ;;  %1680 = vpow2.f32 %v941_v6  ;;  %v812_v37 = vsub.f32 %v2273_v43, %v721_v63 }
 0x1d6   : > { %v2437_v17 = vpop.eup %1662  ;;  %1682 = vpow2.f32 %v879_v11  ;;  %v943_v19 = vmul.f32 1.442695, %v841_v30  ;;  %v945_v40 = vmul.f32 1.442695, %v842_v32  ;;  %996 = vadd.xlane.f32.xlu0 %v995_v0 }
 0x1d7   : > { %v883_v22 = vmul.f32 1.442695, %v811_v35  ;;  %v2439_v23 = vpop.eup %1664  ;;  %1684 = vpow2.f32 %v881_v57  ;;  %v885_v36 = vmul.f32 1.442695, %v812_v37  ;;  %v724_v25 = vpop.xlane.xlu1 %723 }
 0x1d8   : > { %v769_v38 = vpop.xlane.xlu0 %768  ;;  %v2441_v41 = vpop.eup %1666  ;;  %1686 = vpow2.f32 %v943_v19  ;;  %v813_v21 = vsub.f32 %v2281_v47, %v724_v25  ;;  %v814_v46 = vsub.f32 %v2285_v49, %v724_v25 }
 0x1d9   : > { %v843_v43 = vsub.f32 %v2271_v42, %v769_v38  ;;  %v844_v18 = vsub.f32 %v2275_v44, %v769_v38  ;;  %v2446_v20 = vpop.eup %1668  ;;  %1688 = vpow2.f32 %v945_v40 }
 0x1da   : > { %v2449_v51 = vpop.eup %1670  ;;  %1690 = vpow2.f32 %v883_v22  ;;  %v887_v24 = vmul.f32 1.442695, %v813_v21  ;;  %v889_v29 = vmul.f32 1.442695, %v814_v46  ;;  %v1043_v42 = vadd.f32 %v2446_v20, %v2441_v41 }
 0x1db   : > { %v947_v5 = vmul.f32 1.442695, %v843_v43  ;;  %v949_v39 = vmul.f32 1.442695, %v844_v18  ;;  %v2451_v26 = vpop.eup %1672  ;;  %1692 = vpow2.f32 %v885_v36  ;;  %v772_v44 = vpop.xlane.xlu1 %771  ;;  %v1046_v18 = vadd.f32 %v2439_v23, %v2437_v17 }
 0x1dc   : > { %v727_v47 = vpop.xlane.xlu0 %726  ;;  %v2455_v31 = vpop.eup %1674  ;;  %v845_v49 = vsub.f32 %v2283_v48, %v772_v44  ;;  %v846_v6 = vsub.f32 %v2287_v50, %v772_v44  ;;  %1044 = vadd.xlane.f32.xlu0 %v1043_v42  ;;  %v998_v63 = vadd.f32 %v2451_v26, %v2449_v51 }
 0x1dd   : > { %1694 = vpow2.f32 %v947_v5  ;;  %v815_v11 = vsub.f32 %v2293_v53, %v727_v47  ;;  %v2460_v57 = vpop.eup %1676  ;;  %v816_v52 = vsub.f32 %v2297_v55, %v727_v47 }
 0x1de   : > { %1696 = vpow2.f32 %v949_v39  ;;  %v2465_v30 = vpop.eup %1678  ;;  %v951_v32 = vmul.f32 1.442695, %v845_v49  ;;  %v953_v35 = vmul.f32 1.442695, %v846_v6  ;;  %v1001_v53 = vadd.f32 %v2460_v57, %v2455_v31  ;;  %999 = vadd.xlane.f32.xlu1 %v998_v63 }
 0x1df   : > { %1698 = vpow2.f32 %v887_v24  ;;  %v891_v37 = vmul.f32 1.442695, %v815_v11  ;;  %v2467_v48 = vpop.eup %1680  ;;  %v893_v50 = vmul.f32 1.442695, %v816_v52  ;;  %v730_v19 = vpop.xlane.xlu1 %729 }
 0x1e0   : > { %1700 = vpow2.f32 %v889_v29  ;;  %v775_v0 = vpop.xlane.xlu0 %774  ;;  %v2471_v55 = vpop.eup %1682  ;;  %v817_v36 = vsub.f32 %v2305_v59, %v730_v19  ;;  %1002 = vadd.xlane.f32.xlu0 %v1001_v53  ;;  %v818_v25 = vsub.f32 %v2309_v61, %v730_v19  ;;  %v1049_v43 = vadd.f32 %v2467_v48, %v2465_v30 }
 0x1e1   : > { %1702 = vpow2.f32 %v951_v32  ;;  %v847_v40 = vsub.f32 %v2295_v54, %v775_v0  ;;  %v848_v22 = vsub.f32 %v2299_v56, %v775_v0  ;;  %v2476_v38 = vpop.eup %1684 }
 0x1e2   : > { %1704 = vpow2.f32 %v953_v35  ;;  %v2483_v21 = vpop.eup %1686  ;;  %v895_v56 = vmul.f32 1.442695, %v817_v36  ;;  %v897_v59 = vmul.f32 1.442695, %v818_v25  ;;  %1047 = vadd.xlane.f32.xlu1 %v1046_v18  ;;  %v1004_v6 = vadd.f32 %v2476_v38, %v2471_v55 }
 0x1e3   : > { %1706 = vpow2.f32 %v891_v37  ;;  %v955_v54 = vmul.f32 1.442695, %v847_v40  ;;  %v957_v46 = vmul.f32 1.442695, %v848_v22  ;;  %v2485_v5 = vpop.eup %1688  ;;  %v778_v39 = vpop.xlane.xlu1 %777 }
 0x1e4   : > { %1708 = vpow2.f32 %v893_v50  ;;  %v733_v24 = vpop.xlane.xlu0 %732  ;;  %v2487_v61 = vpop.eup %1690  ;;  %v849_v29 = vsub.f32 %v2307_v60, %v778_v39  ;;  %v850_v42 = vsub.f32 %v2311_v62, %v778_v39  ;;  %1050 = vadd.xlane.f32.xlu0 %v1049_v43  ;;  %v1052_v36 = vadd.f32 %v2485_v5, %v2483_v21 }
 0x1e5   : > { %1710 = vpow2.f32 %v955_v54  ;;  %v819_v44 = vsub.f32 %v2317_v1, %v733_v24  ;;  %v2492_v47 = vpop.eup %1692  ;;  %v820_v49 = vsub.f32 %v2321_v3, %v733_v24 }
 0x1e6   : > { %1712 = vpow2.f32 %v957_v46  ;;  %v959_v52 = vmul.f32 1.442695, %v849_v29  ;;  %v961_v63 = vmul.f32 1.442695, %v850_v42  ;;  %v1007_v1 = vadd.f32 %v2492_v47, %v2487_v61  ;;  %1005 = vadd.xlane.f32.xlu1 %v1004_v6 }
 0x1e7   : > { %v2497_v11 = vpop.eup %1694  ;;  %1714 = vpow2.f32 %v895_v56  ;;  %v899_v32 = vmul.f32 1.442695, %v819_v44  ;;  %v901_v62 = vmul.f32 1.442695, %v820_v49  ;;  %v736_v37 = vpop.xlane.xlu1 %735 }
 0x1e8   : > { %v2499_v60 = vpop.eup %1696  ;;  %1716 = vpow2.f32 %v897_v59  ;;  %v781_v35 = vpop.xlane.xlu0 %780  ;;  %v821_v0 = vsub.f32 %v2329_v7, %v736_v37  ;;  %1008 = vadd.xlane.f32.xlu0 %v1007_v1  ;;  %v822_v40 = vsub.f32 %v2333_v9, %v736_v37 }
 0x1e9   : > { %v2503_v3 = vpop.eup %1698  ;;  %1718 = vpow2.f32 %v959_v52  ;;  %v851_v50 = vsub.f32 %v2319_v2, %v781_v35  ;;  %v852_v53 = vsub.f32 %v2323_v4, %v781_v35  ;;  %v1055_v22 = vadd.f32 %v2499_v60, %v2497_v11 }
 0x1ea   : > { %v2508_v19 = vpop.eup %1700  ;;  %1720 = vpow2.f32 %v961_v63  ;;  %v903_v4 = vmul.f32 1.442695, %v821_v0  ;;  %v905_v7 = vmul.f32 1.442695, %v822_v40  ;;  %1053 = vadd.xlane.f32.xlu1 %v1052_v36 }
 0x1eb   : > { %v2515_v25 = vpop.eup %1702  ;;  %1722 = vpow2.f32 %v899_v32  ;;  %v963_v2 = vmul.f32 1.442695, %v851_v50  ;;  %v965_v43 = vmul.f32 1.442695, %v852_v53  ;;  %v784_v54 = vpop.xlane.xlu1 %783  ;;  %v1010_v42 = vadd.f32 %v2508_v19, %v2503_v3 }
 0x1ec   : > { %v2517_v18 = vpop.eup %1704  ;;  %1724 = vpow2.f32 %v901_v62  ;;  %v739_v46 = vpop.xlane.xlu0 %738  ;;  %v853_v56 = vsub.f32 %v2331_v8, %v784_v54  ;;  %v854_v59 = vsub.f32 %v2335_v10, %v784_v54  ;;  %1056 = vadd.xlane.f32.xlu0 %v1055_v22 }
 0x1ed   : > { %v2519_v9 = vpop.eup %1706  ;;  %1726 = vpow2.f32 %v963_v2  ;;  %v823_v39 = vsub.f32 %v2341_v13, %v739_v46  ;;  %v824_v29 = vsub.f32 %v2345_v15, %v739_v46  ;;  %v1058_v0 = vadd.f32 %v2517_v18, %v2515_v25 }
 0x1ee   : > { %v2524_v24 = vpop.eup %1708  ;;  %1728 = vpow2.f32 %v965_v43  ;;  %v967_v49 = vmul.f32 1.442695, %v853_v56  ;;  %v969_v6 = vmul.f32 1.442695, %v854_v59  ;;  %1011 = vadd.xlane.f32.xlu1 %v1010_v42  ;;  %v2905_v56 = vld [vmem:[#allocation6_spill] sm:$0xff] }
 0x1ef   : > { %v2529_v44 = vpop.eup %1710  ;;  %1730 = vpow2.f32 %v903_v4  ;;  %v907_v52 = vmul.f32 1.442695, %v823_v39  ;;  %v909_v10 = vmul.f32 1.442695, %v824_v29  ;;  %v1013_v13 = vadd.f32 %v2524_v24, %v2519_v9  ;;  %v742_v32 = vpop.xlane.xlu1 %741 }
 0x1f0   : > { %v2531_v8 = vpop.eup %1712  ;;  %1732 = vpow2.f32 %v905_v7  ;;  %v787_v63 = vpop.xlane.xlu0 %786  ;;  %v825_v35 = vsub.f32 %v2353_v27, %v742_v32  ;;  %v826_v50 = vsub.f32 %v2357_v33, %v742_v32 }
 0x1f1   : > { %v2535_v15 = vpop.eup %1714  ;;  %1734 = vpow2.f32 %v967_v49  ;;  %v855_v62 = vsub.f32 %v2343_v14, %v787_v63  ;;  %v856_v1 = vsub.f32 %v2347_v16, %v787_v63  ;;  %1014 = vadd.xlane.f32.xlu0 %v1013_v13  ;;  %v1061_v53 = vadd.f32 %v2531_v8, %v2529_v44  ;;  %v2906_v63 = vld [vmem:[#allocation5_spill] sm:$0xff] }
 0x1f2   : > { %v2540_v37 = vpop.eup %1716  ;;  %1736 = vpow2.f32 %v969_v6  ;;  %v911_v16 = vmul.f32 1.442695, %v825_v35  ;;  %v913_v27 = vmul.f32 1.442695, %v826_v50  ;;  %1059 = vadd.xlane.f32.xlu1 %v1058_v0  ;;  %v2908_v35 = vld [vmem:[#allocation8_spill] sm:$0xff]  ;;  %v2909_v0 = vld [vmem:[#allocation10_spill] sm:$0xff] }
 0x1f3   : > { %v2547_v40 = vpop.eup %1718  ;;  %1738 = vpow2.f32 %v907_v52  ;;  %v971_v14 = vmul.f32 1.442695, %v855_v62  ;;  %v973_v22 = vmul.f32 1.442695, %v856_v1  ;;  %v790_v2 = vpop.xlane.xlu1 %789  ;;  %v1016_v39 = vadd.f32 %v2540_v37, %v2535_v15  ;;  %v2907_v62 = vld [vmem:[#allocation7_spill] sm:$0xff] }
 0x1f4   : > { %v2549_v36 = vpop.eup %1720  ;;  %1740 = vpow2.f32 %v909_v10  ;;  %v745_v43 = vpop.xlane.xlu0 %744  ;;  %v857_v4 = vsub.f32 %v2355_v28, %v790_v2  ;;  %v858_v7 = vsub.f32 %v2359_v34, %v790_v2 }
 0x1f5   : > { %v2551_v33 = vpop.eup %1722  ;;  %1742 = vpow2.f32 %v971_v14  ;;  %v827_v54 = vsub.f32 %v2365_v45, %v745_v43  ;;  %1062 = vadd.xlane.f32.xlu0 %v1061_v53  ;;  %v828_v59 = vsub.f32 %v2905_v56, %v745_v43 }
 0x1f6   : > { %v2556_v46 = vpop.eup %1724  ;;  %1744 = vpow2.f32 %v973_v22  ;;  %v975_v42 = vmul.f32 1.442695, %v857_v4  ;;  %v977_v49 = vmul.f32 1.442695, %v858_v7  ;;  %1017 = vadd.xlane.f32.xlu1 %v1016_v39 }
 0x1f7   : > { %v2561_v29 = vpop.eup %1726  ;;  %1746 = vpow2.f32 %v911_v16  ;;  %v915_v6 = vmul.f32 1.442695, %v827_v54  ;;  %v917_v34 = vmul.f32 1.442695, %v828_v59  ;;  %v1019_v45 = vadd.f32 %v2556_v46, %v2551_v33  ;;  %v748_v10 = vpop.xlane.xlu1 %747 }
 0x1f8   : > { %v2563_v28 = vpop.eup %1728  ;;  %1748 = vpow2.f32 %v913_v27  ;;  %v793_v52 = vpop.xlane.xlu0 %792  ;;  %v829_v50 = vsub.f32 %v2908_v35, %v748_v10  ;;  %v830_v14 = vsub.f32 %v2909_v0, %v748_v10  ;;  %v1064_v16 = vadd.f32 %v2549_v36, %v2547_v40  ;;  %v2913_v10 = vld [vmem:[#allocation12_spill] sm:$0xff] }
 0x1f9   : > { %v2567_v13 = vpop.eup %1730  ;;  %1750 = vpow2.f32 %v975_v42  ;;  %v859_v32 = vsub.f32 %v2906_v63, %v793_v52  ;;  %v860_v1 = vsub.f32 %v2907_v62, %v793_v52  ;;  %1020 = vadd.xlane.f32.xlu0 %v1019_v45  ;;  %v1067_v22 = vadd.f32 %v2563_v28, %v2561_v29  ;;  %v2911_v42 = vld [vmem:[#allocation9_spill] sm:$0xff]  ;;  %v2912_v45 = vld [vmem:[#allocation11_spill] sm:$0xff] }
 0x1fa   : > { %v2572_v53 = vpop.eup %1732  ;;  %1752 = vpow2.f32 %v977_v49  ;;  %v919_v4 = vmul.f32 1.442695, %v829_v50  ;;  %v921_v54 = vmul.f32 1.442695, %v830_v14  ;;  %1065 = vadd.xlane.f32.xlu1 %v1064_v16 }
 0x1fb   : > { %v2579_v27 = vpop.eup %1734  ;;  %1754 = vpow2.f32 %v915_v6  ;;  %v979_v2 = vmul.f32 1.442695, %v859_v32  ;;  %v981_v43 = vmul.f32 1.442695, %v860_v1  ;;  %v796_v56 = vpop.xlane.xlu1 %795  ;;  %v2914_v32 = vld [vmem:[#allocation14_spill] sm:$0xff] }
 0x1fc   : > { %v2581_v7 = vpop.eup %1736  ;;  %1756 = vpow2.f32 %v917_v34  ;;  %v751_v59 = vpop.xlane.xlu0 %750  ;;  %v861_v49 = vsub.f32 %v2911_v42, %v796_v56  ;;  %v862_v52 = vsub.f32 %v2912_v45, %v796_v56  ;;  %v1022_v34 = vadd.f32 %v2572_v53, %v2567_v13  ;;  %v2918_v45 = vld [vmem:[#allocation15_spill] sm:$0xff] }
 0x1fd   : > { %2910 = vst [vmem:[#allocation6_spill] sm:$0xff] %v2581_v7  ;;  %v2583_v39 = vpop.eup %1738  ;;  %1758 = vpow2.f32 %v979_v2  ;;  %v831_v63 = vsub.f32 %v2913_v10, %v751_v59  ;;  %1068 = vadd.xlane.f32.xlu0 %v1067_v22  ;;  %v832_v62 = vsub.f32 %v2914_v32, %v751_v59  ;;  %v2917_v59 = vld [vmem:[#allocation13_spill] sm:$0xff] }
 0x1fe   : > { %v2588_v6 = vpop.eup %1740  ;;  %1760 = vpow2.f32 %v981_v43  ;;  %v983_v35 = vmul.f32 1.442695, %v861_v49  ;;  %v985_v50 = vmul.f32 1.442695, %v862_v52  ;;  %1023 = vadd.xlane.f32.xlu1 %v1022_v34  ;;  %v2919_v49 = vld [vmem:[#allocation16_spill] sm:$0xff] }
 0x1ff   : > { %v2593_v1 = vpop.eup %1742  ;;  %1762 = vpow2.f32 %v919_v4  ;;  %v923_v0 = vmul.f32 1.442695, %v831_v63  ;;  %v925_v16 = vmul.f32 1.442695, %v832_v62  ;;  %v1025_v2 = vadd.f32 %v2588_v6, %v2583_v39  ;;  %v754_v43 = vpop.xlane.xlu1 %753 }
 0x200   : > { %2915 = vst [vmem:[#allocation5_spill] sm:$0xff] %v2593_v1  ;;  %v2595_v14 = vpop.eup %1744  ;;  %1764 = vpow2.f32 %v921_v54  ;;  %v799_v22 = vpop.xlane.xlu0 %798  ;;  %v833_v52 = vsub.f32 %v2919_v49, %v754_v43  ;;  %v2920_v54 = vld [vmem:[#allocation18_spill] sm:$0xff]  ;;  %v1070_v62 = vadd.f32 %v2581_v7, %v2579_v27  ;;  %v2921_v49 = vld [vmem:[#allocation17_spill] sm:$0xff] }
 0x201   : > { %2916 = vst [vmem:[#allocation7_spill] sm:$0xff] %v2595_v14  ;;  %v2599_v56 = vpop.eup %1746  ;;  %1766 = vpow2.f32 %v983_v35  ;;  %v863_v42 = vsub.f32 %v2917_v59, %v799_v22  ;;  %v864_v4 = vsub.f32 %v2918_v45, %v799_v22  ;;  %1026 = vadd.xlane.f32.xlu0 %v1025_v2  ;;  %v834_v63 = vsub.f32 %v2920_v54, %v754_v43 }
 0x202   : > { %v2604_v10 = vpop.eup %1748  ;;  %1768 = vpow2.f32 %v985_v50  ;;  %v1073_v32 = vadd.f32 %v2595_v14, %v2593_v1  ;;  %v927_v45 = vmul.f32 1.442695, %v833_v52  ;;  %1071 = vadd.xlane.f32.xlu1 %v1070_v62  ;;  %v2922_v14 = vld [vmem:[#allocation19_spill] sm:$0xff] }
 0x203   : > { %v2611_v34 = vpop.eup %1750  ;;  %1770 = vpow2.f32 %v923_v0  ;;  %v987_v35 = vmul.f32 1.442695, %v863_v42  ;;  %v989_v59 = vmul.f32 1.442695, %v864_v4  ;;  %v802_v50 = vpop.xlane.xlu1 %801  ;;  %v929_v43 = vmul.f32 1.442695, %v834_v63 }
 0x204   : > { %v2613_v22 = vpop.eup %1752  ;;  %1772 = vpow2.f32 %v925_v16  ;;  %v865_v54 = vsub.f32 %v2921_v49, %v802_v50  ;;  %v866_v1 = vsub.f32 %v2922_v14, %v802_v50  ;;  %v1028_v0 = vadd.f32 %v2604_v10, %v2599_v56 }
 0x205   : > { %v2615_v2 = vpop.eup %1754  ;;  %1774 = vpow2.f32 %v987_v35  ;;  %1074 = vadd.xlane.f32.xlu0 %v1073_v32  ;;  %v1076_v35 = vadd.f32 %v2613_v22, %v2611_v34 }
 0x206   : > { %v2619_v7 = vpop.eup %1756  ;;  %1776 = vpow2.f32 %v989_v59  ;;  %v991_v52 = vmul.f32 1.442695, %v865_v54  ;;  %1029 = vadd.xlane.f32.xlu1 %v1028_v0  ;;  %v993_v14 = vmul.f32 1.442695, %v866_v1 }
 0x207   : > { %v2623_v42 = vpop.eup %1758  ;;  %v1031_v16 = vadd.f32 %v2619_v7, %v2615_v2  ;;  %1778 = vpow2.f32 %v927_v45 }
 0x208   : > { %v2627_v4 = vpop.eup %1760  ;;  %1780 = vpow2.f32 %v929_v43 }
 0x209   : > { %v2629_v63 = vpop.eup %1762  ;;  %1032 = vadd.xlane.f32.xlu0 %v1031_v16  ;;  %v1079_v32 = vadd.f32 %v2627_v4, %v2623_v42  ;;  %1782 = vpow2.f32 %v991_v52 }
 0x20a   : > { %v2631_v62 = vpop.eup %1764  ;;  %1077 = vadd.xlane.f32.xlu1 %v1076_v35  ;;  %1784 = vpow2.f32 %v993_v14 }
 0x20b   : > { %v2637_v59 = vpop.eup %1766  ;;  %v1034_v1 = vadd.f32 %v2631_v62, %v2629_v63 }
 0x20c   : > { %v2639_v50 = vpop.eup %1768 }
 0x20d   : > { %2923 = vst [vmem:[#allocation8_spill] sm:$0xff] %v2639_v50  ;;  %v2641_v45 = vpop.eup %1770  ;;  %1080 = vadd.xlane.f32.xlu0 %v1079_v32  ;;  %v1082_v14 = vadd.f32 %v2639_v50, %v2637_v59 }
 0x20e   : > { %v2643_v43 = vpop.eup %1772  ;;  %1035 = vadd.xlane.f32.xlu1 %v1034_v1 }
 0x20f   : > { %2924 = vst [vmem:[#allocation10_spill] sm:$0xff] %v2643_v43  ;;  %v2647_v49 = vpop.eup %1774  ;;  %v1037_v54 = vadd.f32 %v2643_v43, %v2641_v45 }
 0x210   : > { %2925 = vst [vmem:[#allocation9_spill] sm:$0xff] %v2647_v49  ;;  %v2651_v0 = vpop.eup %1776 }
 0x211   : > { %2926 = vst [vmem:[#allocation11_spill] sm:$0xff] %v2651_v0  ;;  %v2653_v16 = vpop.eup %1778  ;;  %1038 = vadd.xlane.f32.xlu0 %v1037_v54  ;;  %v1085_v52 = vadd.f32 %v2651_v0, %v2647_v49 }
 0x212   : > { %2927 = vst [vmem:[#allocation12_spill] sm:$0xff] %v2653_v16  ;;  %v2659_v32 = vpop.eup %1780  ;;  %1083 = vadd.xlane.f32.xlu1 %v1082_v14 }
 0x213   : > { %2928 = vst [vmem:[#allocation14_spill] sm:$0xff] %v2659_v32  ;;  %v2661_v35 = vpop.eup %1782  ;;  %v1040_v1 = vadd.f32 %v2659_v32, %v2653_v16 }
 0x214   : > { %v2665_v43 = vpop.eup %1784 }
 0x215   : > { %1086 = vadd.xlane.f32.xlu0 %v1085_v52  ;;  %v1088_v54 = vadd.f32 %v2665_v43, %v2661_v35 }
 0x216   : > { %1041 = vadd.xlane.f32.xlu1 %v1040_v1 }
 0x21a   : > { %1089 = vadd.xlane.f32.xlu1 %v1088_v54 }
 0x263   : > { %v997_v0 = vpop.xlane.xlu0 %996 }
 0x264   : > { %1786 = vrcp.f32 %v997_v0 }
 0x269   : > { %v1045_v49 = vpop.xlane.xlu0 %1044 }
 0x26a   : > { %1788 = vrcp.f32 %v1045_v49 }
 0x26b   : > { %v1000_v14 = vpop.xlane.xlu1 %999 }
 0x26c   : > { %1790 = vrcp.f32 %v1000_v14 }
 0x26d   : > { %v1003_v52 = vpop.xlane.xlu0 %1002 }
 0x26e   : > { %v1787_v50 = vpop.eup %1786  ;;  %1792 = vrcp.f32 %v1003_v52 }
 0x26f   : > { %v1123_v32 = vmul.f32 %v1787_v50, %v2427_v58  ;;  %v1124_v1 = vmul.f32 %v1787_v50, %v2429_v12  ;;  %v1048_v16 = vpop.xlane.xlu1 %1047 }
 0x270   : > { %1794 = vrcp.f32 %v1048_v16 }
 0x271   : > { %1187 = vst [vmem:[%s2674_s5] sm:$0xff] %v1123_v32  ;;  %1188 = vst [vmem:[%s2674_s5 + $0x8] sm:$0xff] %v1124_v1  ;;  %v1051_v49 = vpop.xlane.xlu0 %1050 }
 0x272   : > { %1796 = vrcp.f32 %v1051_v49 }
 0x273   : > { %v1006_v0 = vpop.xlane.xlu1 %1005 }
 0x274   : > { %v1789_v54 = vpop.eup %1788  ;;  %1798 = vrcp.f32 %v1006_v0 }
 0x275   : > { %v1155_v58 = vmul.f32 %v1789_v54, %v2441_v41  ;;  %v1156_v12 = vmul.f32 %v1789_v54, %v2446_v20  ;;  %v1009_v50 = vpop.xlane.xlu0 %1008 }
 0x276   : > { %v1791_v16 = vpop.eup %1790  ;;  %1800 = vrcp.f32 %v1009_v50 }
 0x277   : > { %1219 = vst [vmem:[%s2674_s5 + $0x100] sm:$0xff] %v1155_v58  ;;  %1220 = vst [vmem:[%s2674_s5 + $0x108] sm:$0xff] %v1156_v12  ;;  %v1125_v32 = vmul.f32 %v1791_v16, %v2449_v51  ;;  %v1126_v14 = vmul.f32 %v1791_v16, %v2451_v26  ;;  %v1054_v52 = vpop.xlane.xlu1 %1053 }
 0x278   : > { %v1793_v1 = vpop.eup %1792  ;;  %1802 = vrcp.f32 %v1054_v52 }
 0x279   : > { %v1127_v49 = vmul.f32 %v1793_v1, %v2455_v31  ;;  %v1128_v41 = vmul.f32 %v1793_v1, %v2460_v57  ;;  %1189 = vst [vmem:[%s2674_s5 + $0x10] sm:$0xff] %v1125_v32  ;;  %1190 = vst [vmem:[%s2674_s5 + $0x18] sm:$0xff] %v1126_v14  ;;  %v1057_v20 = vpop.xlane.xlu0 %1056 }
 0x27a   : > { %v1795_v0 = vpop.eup %1794  ;;  %1804 = vrcp.f32 %v1057_v20 }
 0x27b   : > { %1191 = vst [vmem:[%s2674_s5 + $0x20] sm:$0xff] %v1127_v49  ;;  %1192 = vst [vmem:[%s2674_s5 + $0x28] sm:$0xff] %v1128_v41  ;;  %v1157_v51 = vmul.f32 %v1795_v0, %v2437_v17  ;;  %v1158_v26 = vmul.f32 %v1795_v0, %v2439_v23  ;;  %v1012_v54 = vpop.xlane.xlu1 %1011 }
 0x27c   : > { %v1797_v58 = vpop.eup %1796  ;;  %1806 = vrcp.f32 %v1012_v54 }
 0x27d   : > { %v1159_v31 = vmul.f32 %v1797_v58, %v2465_v30  ;;  %v1160_v57 = vmul.f32 %v1797_v58, %v2467_v48  ;;  %1221 = vst [vmem:[%s2674_s5 + $0x110] sm:$0xff] %v1157_v51  ;;  %1222 = vst [vmem:[%s2674_s5 + $0x118] sm:$0xff] %v1158_v26 }
 0x27e   : > { %v1015_v12 = vpop.xlane.xlu0 %1014  ;;  %v1799_v50 = vpop.eup %1798 }
 0x27f   : > { %1808 = vrcp.f32 %v1015_v12  ;;  %1223 = vst [vmem:[%s2674_s5 + $0x120] sm:$0xff] %v1159_v31  ;;  %1224 = vst [vmem:[%s2674_s5 + $0x128] sm:$0xff] %v1160_v57  ;;  %v1129_v17 = vmul.f32 %v1799_v50, %v2471_v55  ;;  %v1130_v23 = vmul.f32 %v1799_v50, %v2476_v38  ;;  %v1060_v16 = vpop.xlane.xlu1 %1059 }
 0x280   : > { %v1801_v32 = vpop.eup %1800  ;;  %1810 = vrcp.f32 %v1060_v16 }
 0x281   : > { %v1131_v30 = vmul.f32 %v1801_v32, %v2487_v61  ;;  %v1132_v48 = vmul.f32 %v1801_v32, %v2492_v47  ;;  %1193 = vst [vmem:[%s2674_s5 + $0x30] sm:$0xff] %v1129_v17  ;;  %1194 = vst [vmem:[%s2674_s5 + $0x38] sm:$0xff] %v1130_v23 }
 0x282   : > { %v1063_v14 = vpop.xlane.xlu0 %1062  ;;  %v1803_v52 = vpop.eup %1802 }
 0x283   : > { %1812 = vrcp.f32 %v1063_v14  ;;  %1195 = vst [vmem:[%s2674_s5 + $0x40] sm:$0xff] %v1131_v30  ;;  %1196 = vst [vmem:[%s2674_s5 + $0x48] sm:$0xff] %v1132_v48  ;;  %v1161_v55 = vmul.f32 %v1803_v52, %v2483_v21  ;;  %v1162_v38 = vmul.f32 %v1803_v52, %v2485_v5  ;;  %v1018_v1 = vpop.xlane.xlu1 %1017 }
 0x284   : > { %v1805_v49 = vpop.eup %1804  ;;  %1814 = vrcp.f32 %v1018_v1 }
 0x285   : > { %v1163_v61 = vmul.f32 %v1805_v49, %v2497_v11  ;;  %v1164_v47 = vmul.f32 %v1805_v49, %v2499_v60  ;;  %1225 = vst [vmem:[%s2674_s5 + $0x130] sm:$0xff] %v1161_v55  ;;  %1226 = vst [vmem:[%s2674_s5 + $0x138] sm:$0xff] %v1162_v38 }
 0x286   : > { %v1021_v41 = vpop.xlane.xlu0 %1020  ;;  %v1807_v20 = vpop.eup %1806 }
 0x287   : > { %1816 = vrcp.f32 %v1021_v41  ;;  %1227 = vst [vmem:[%s2674_s5 + $0x140] sm:$0xff] %v1163_v61  ;;  %1228 = vst [vmem:[%s2674_s5 + $0x148] sm:$0xff] %v1164_v47  ;;  %v1133_v21 = vmul.f32 %v1807_v20, %v2503_v3  ;;  %v1134_v5 = vmul.f32 %v1807_v20, %v2508_v19  ;;  %v1066_v0 = vpop.xlane.xlu1 %1065 }
 0x288   : > { %1818 = vrcp.f32 %v1066_v0 }
 0x289   : > { %v1809_v51 = vpop.eup %1808  ;;  %1197 = vst [vmem:[%s2674_s5 + $0x50] sm:$0xff] %v1133_v21  ;;  %1198 = vst [vmem:[%s2674_s5 + $0x58] sm:$0xff] %v1134_v5 }
 0x28a   : > { %v1135_v11 = vmul.f32 %v1809_v51, %v2519_v9  ;;  %v1136_v60 = vmul.f32 %v1809_v51, %v2524_v24  ;;  %v1069_v26 = vpop.xlane.xlu0 %1068  ;;  %v1811_v54 = vpop.eup %1810 }
 0x28b   : > { %1820 = vrcp.f32 %v1069_v26  ;;  %v1165_v3 = vmul.f32 %v1811_v54, %v2515_v25  ;;  %v1166_v19 = vmul.f32 %v1811_v54, %v2517_v18  ;;  %v1024_v58 = vpop.xlane.xlu1 %1023 }
 0x28c   : > { %1199 = vst [vmem:[%s2674_s5 + $0x60] sm:$0xff] %v1135_v11  ;;  %1200 = vst [vmem:[%s2674_s5 + $0x68] sm:$0xff] %v1136_v60  ;;  %1822 = vrcp.f32 %v1024_v58 }
 0x28d   : > { %v1813_v31 = vpop.eup %1812  ;;  %1229 = vst [vmem:[%s2674_s5 + $0x150] sm:$0xff] %v1165_v3  ;;  %1230 = vst [vmem:[%s2674_s5 + $0x158] sm:$0xff] %v1166_v19 }
 0x28e   : > { %v1167_v9 = vmul.f32 %v1813_v31, %v2529_v44  ;;  %v1168_v24 = vmul.f32 %v1813_v31, %v2531_v8  ;;  %v1027_v57 = vpop.xlane.xlu0 %1026  ;;  %v1815_v12 = vpop.eup %1814 }
 0x28f   : > { %1824 = vrcp.f32 %v1027_v57  ;;  %v1137_v25 = vmul.f32 %v1815_v12, %v2535_v15  ;;  %v1138_v18 = vmul.f32 %v1815_v12, %v2540_v37  ;;  %v1072_v50 = vpop.xlane.xlu1 %1071 }
 0x290   : > { %1231 = vst [vmem:[%s2674_s5 + $0x160] sm:$0xff] %v1167_v9  ;;  %1232 = vst [vmem:[%s2674_s5 + $0x168] sm:$0xff] %v1168_v24  ;;  %1826 = vrcp.f32 %v1072_v50  ;;  %v2934_v50 = vld [vmem:[#allocation9_spill] sm:$0xff] }
 0x291   : > { %v1817_v17 = vpop.eup %1816  ;;  %1201 = vst [vmem:[%s2674_s5 + $0x70] sm:$0xff] %v1137_v25  ;;  %1202 = vst [vmem:[%s2674_s5 + $0x78] sm:$0xff] %v1138_v18 }
 0x292   : > { %v1139_v44 = vmul.f32 %v1817_v17, %v2551_v33  ;;  %v1140_v8 = vmul.f32 %v1817_v17, %v2556_v46  ;;  %v1075_v23 = vpop.xlane.xlu0 %1074  ;;  %v1819_v16 = vpop.eup %1818 }
 0x293   : > { %1828 = vrcp.f32 %v1075_v23  ;;  %v1169_v15 = vmul.f32 %v1819_v16, %v2547_v40  ;;  %v1170_v37 = vmul.f32 %v1819_v16, %v2549_v36  ;;  %v1030_v32 = vpop.xlane.xlu1 %1029  ;;  %v2936_v23 = vld [vmem:[#allocation12_spill] sm:$0xff] }
 0x294   : > { %1203 = vst [vmem:[%s2674_s5 + $0x80] sm:$0xff] %v1139_v44  ;;  %1204 = vst [vmem:[%s2674_s5 + $0x88] sm:$0xff] %v1140_v8  ;;  %1830 = vrcp.f32 %v1030_v32 }
 0x295   : > { %v1821_v30 = vpop.eup %1820  ;;  %1233 = vst [vmem:[%s2674_s5 + $0x170] sm:$0xff] %v1169_v15  ;;  %1234 = vst [vmem:[%s2674_s5 + $0x178] sm:$0xff] %v1170_v37  ;;  %v2937_v15 = vld [vmem:[#allocation14_spill] sm:$0xff] }
 0x296   : > { %v1171_v33 = vmul.f32 %v1821_v30, %v2561_v29  ;;  %v1172_v46 = vmul.f32 %v1821_v30, %v2563_v28  ;;  %v1033_v48 = vpop.xlane.xlu0 %1032  ;;  %v1823_v14 = vpop.eup %1822 }
 0x297   : > { %1832 = vrcp.f32 %v1033_v48  ;;  %v1141_v40 = vmul.f32 %v1823_v14, %v2567_v13  ;;  %v1142_v36 = vmul.f32 %v1823_v14, %v2572_v53  ;;  %v1078_v52 = vpop.xlane.xlu1 %1077  ;;  %v2929_v53 = vld [vmem:[#allocation6_spill] sm:$0xff] }
 0x298   : > { %1235 = vst [vmem:[%s2674_s5 + $0x180] sm:$0xff] %v1171_v33  ;;  %1236 = vst [vmem:[%s2674_s5 + $0x188] sm:$0xff] %v1172_v46  ;;  %1834 = vrcp.f32 %v1078_v52 }
 0x299   : > { %v1825_v55 = vpop.eup %1824  ;;  %1205 = vst [vmem:[%s2674_s5 + $0x90] sm:$0xff] %v1141_v40  ;;  %1206 = vst [vmem:[%s2674_s5 + $0x98] sm:$0xff] %v1142_v36 }
 0x29a   : > { %v1143_v29 = vmul.f32 %v1825_v55, %v2583_v39  ;;  %v1144_v28 = vmul.f32 %v1825_v55, %v2588_v6  ;;  %v1081_v38 = vpop.xlane.xlu0 %1080  ;;  %v1827_v1 = vpop.eup %1826  ;;  %v2930_v39 = vld [vmem:[#allocation5_spill] sm:$0xff]  ;;  %v2931_v6 = vld [vmem:[#allocation7_spill] sm:$0xff] }
 0x29b   : > { %1836 = vrcp.f32 %v1081_v38  ;;  %v1173_v13 = vmul.f32 %v1827_v1, %v2579_v27  ;;  %v1174_v49 = vmul.f32 %v1827_v1, %v2929_v53  ;;  %v1036_v61 = vpop.xlane.xlu1 %1035 }
 0x29c   : > { %1207 = vst [vmem:[%s2674_s5 + $0xa0] sm:$0xff] %v1143_v29  ;;  %1208 = vst [vmem:[%s2674_s5 + $0xa8] sm:$0xff] %v1144_v28  ;;  %1838 = vrcp.f32 %v1036_v61 }
 0x29d   : > { %v1829_v47 = vpop.eup %1828  ;;  %1237 = vst [vmem:[%s2674_s5 + $0x190] sm:$0xff] %v1173_v13  ;;  %1238 = vst [vmem:[%s2674_s5 + $0x198] sm:$0xff] %v1174_v49 }
 0x29e   : > { %v1175_v41 = vmul.f32 %v1829_v47, %v2930_v39  ;;  %v1176_v20 = vmul.f32 %v1829_v47, %v2931_v6  ;;  %v1039_v21 = vpop.xlane.xlu0 %1038  ;;  %v1831_v5 = vpop.eup %1830 }
 0x29f   : > { %1840 = vrcp.f32 %v1039_v21  ;;  %v1145_v27 = vmul.f32 %v1831_v5, %v2599_v56  ;;  %v1146_v0 = vmul.f32 %v1831_v5, %v2604_v10  ;;  %v1084_v51 = vpop.xlane.xlu1 %1083 }
 0x2a0   : > { %1239 = vst [vmem:[%s2674_s5 + $0x1a0] sm:$0xff] %v1175_v41  ;;  %1240 = vst [vmem:[%s2674_s5 + $0x1a8] sm:$0xff] %v1176_v20  ;;  %1842 = vrcp.f32 %v1084_v51 }
 0x2a1   : > { %v1833_v11 = vpop.eup %1832  ;;  %1209 = vst [vmem:[%s2674_s5 + $0xb0] sm:$0xff] %v1145_v27  ;;  %1210 = vst [vmem:[%s2674_s5 + $0xb8] sm:$0xff] %v1146_v0 }
 0x2a2   : > { %v1147_v60 = vmul.f32 %v1833_v11, %v2615_v2  ;;  %v1148_v26 = vmul.f32 %v1833_v11, %v2619_v7  ;;  %v1087_v54 = vpop.xlane.xlu0 %1086  ;;  %v1835_v3 = vpop.eup %1834 }
 0x2a3   : > { %1844 = vrcp.f32 %v1087_v54  ;;  %v1177_v56 = vmul.f32 %v1835_v3, %v2611_v34  ;;  %v1178_v10 = vmul.f32 %v1835_v3, %v2613_v22  ;;  %v1042_v19 = vpop.xlane.xlu1 %1041 }
 0x2a4   : > { %1211 = vst [vmem:[%s2674_s5 + $0xc0] sm:$0xff] %v1147_v60  ;;  %1212 = vst [vmem:[%s2674_s5 + $0xc8] sm:$0xff] %v1148_v26  ;;  %1846 = vrcp.f32 %v1042_v19 }
 0x2a5   : > { %v1837_v58 = vpop.eup %1836  ;;  %1241 = vst [vmem:[%s2674_s5 + $0x1b0] sm:$0xff] %v1177_v56  ;;  %1242 = vst [vmem:[%s2674_s5 + $0x1b8] sm:$0xff] %v1178_v10 }
 0x2a6   : > { %v1179_v7 = vmul.f32 %v1837_v58, %v2623_v42  ;;  %v1180_v2 = vmul.f32 %v1837_v58, %v2627_v4  ;;  %v1839_v31 = vpop.eup %1838  ;;  %v2932_v4 = vld [vmem:[#allocation10_spill] sm:$0xff] }
 0x2a7   : > { %v1149_v34 = vmul.f32 %v1839_v31, %v2629_v63  ;;  %v1150_v22 = vmul.f32 %v1839_v31, %v2631_v62  ;;  %v1090_v9 = vpop.xlane.xlu1 %1089  ;;  %v2933_v62 = vld [vmem:[#allocation8_spill] sm:$0xff] }
 0x2a8   : > { %1243 = vst [vmem:[%s2674_s5 + $0x1c0] sm:$0xff] %v1179_v7  ;;  %1244 = vst [vmem:[%s2674_s5 + $0x1c8] sm:$0xff] %v1180_v2  ;;  %1848 = vrcp.f32 %v1090_v9 }
 0x2a9   : > { %v1841_v24 = vpop.eup %1840  ;;  %1213 = vst [vmem:[%s2674_s5 + $0xd0] sm:$0xff] %v1149_v34  ;;  %1214 = vst [vmem:[%s2674_s5 + $0xd8] sm:$0xff] %v1150_v22 }
 0x2aa   : > { %v1151_v42 = vmul.f32 %v1841_v24, %v2641_v45  ;;  %v1152_v57 = vmul.f32 %v1841_v24, %v2932_v4  ;;  %v1843_v12 = vpop.eup %1842  ;;  %v2935_v45 = vld [vmem:[#allocation11_spill] sm:$0xff] }
 0x2ab   : > { %v1181_v63 = vmul.f32 %v1843_v12, %v2637_v59  ;;  %v1182_v25 = vmul.f32 %v1843_v12, %v2933_v62 }
 0x2ac   : > { %1215 = vst [vmem:[%s2674_s5 + $0xe0] sm:$0xff] %v1151_v42  ;;  %1216 = vst [vmem:[%s2674_s5 + $0xe8] sm:$0xff] %v1152_v57 }
 0x2ad   : > { %v1845_v18 = vpop.eup %1844  ;;  %1245 = vst [vmem:[%s2674_s5 + $0x1d0] sm:$0xff] %v1181_v63  ;;  %1246 = vst [vmem:[%s2674_s5 + $0x1d8] sm:$0xff] %v1182_v25 }
 0x2ae   : > { %v1183_v17 = vmul.f32 %v1845_v18, %v2934_v50  ;;  %v1184_v44 = vmul.f32 %v1845_v18, %v2935_v45  ;;  %v1847_v8 = vpop.eup %1846 }
 0x2af   : > { %v1153_v16 = vmul.f32 %v1847_v8, %v2936_v23  ;;  %v1154_v59 = vmul.f32 %v1847_v8, %v2937_v15 }
 0x2b0   : > { %1247 = vst [vmem:[%s2674_s5 + $0x1e0] sm:$0xff] %v1183_v17  ;;  %1248 = vst [vmem:[%s2674_s5 + $0x1e8] sm:$0xff] %v1184_v44 }
 0x2b1   : > { %1217 = vst [vmem:[%s2674_s5 + $0xf0] sm:$0xff] %v1153_v16  ;;  %1218 = vst [vmem:[%s2674_s5 + $0xf8] sm:$0xff] %v1154_v59 }
 0x2b2   : > { %v1849_v37 = vpop.eup %1848 }
 0x2b3   : > { %v1185_v32 = vmul.f32 %v1849_v37, %v2661_v35  ;;  %v1186_v30 = vmul.f32 %v1849_v37, %v2665_v43 }
 0x2b5   : > { %1249 = vst [vmem:[%s2674_s5 + $0x1f0] sm:$0xff] %v1185_v32  ;;  %1250 = vst [vmem:[%s2674_s5 + $0x1f8] sm:$0xff] %v1186_v30 }
 0x2b6   : > { %1863 = shalt.err (!%p1860_p5)
}
 0x2b7   : > { %s1864_s25 = scalar_lea.hbm %s2803_s16, 8192  ;;  %s1868_s28 = scalar_lea.hbm %s2861_s2, 16384 }
 0x2b8   : > { %p1865_p6 = scmp.ne.s32.totalorder %s2803_s16, %s1864_s25  ;;  %p1869_p10 = scmp.lt.u32.totalorder %s2803_s16, %s2861_s2 }
 0x2b9   : > { %p1870_p11 = scmp.lt.u32.totalorder %s1868_s28, %s1864_s25  ;;  %p1872_p13 = scmp.lt.u32.totalorder %s1864_s25, %s2803_s16 }
 0x2ba   : > { %p1866_p7 = pnand %p1865_p6, %p1988_p4 }
 0x2bb   : > { %p1871_p12 = por %p1870_p11, %p1869_p10 }
 0x2bc   : > { %p1867_p9 = pneg %p1866_p7 }
 0x2bd   : > { %p1873_p0 = por %p1872_p13, %p1871_p12 }
 0x2bf   : > { %p1874_p1 = pnand %p1873_p0, %p1867_p9 }
 0x2c1   : > { %1877 = shalt.err (!%p1874_p1)
}
 0x2c2   : > { %s1931_s3 = smov 256   ;;  %s1932_s4 = smov 16  }
 0x2c3   : > { %1601 = dma.vmem_to_hbm [thread:$0]  (%p1988_p4), %s2805_s7, 8192, %s2803_s16, %s2813_s12, %s1931_s3, %s1931_s3, %s1932_s4  }
 0x2c4 PF: > { %p1607_p2 = scmp.ge.s32.totalorder %s1928_s14, 2  ;;  %s1283_s5 = sand.u32 1, %s1908_s9  }
 0x2c5   : > { %s1284_s6 = scalar_lea.sflag [#allocation3], %s1283_s5 }
 0x2c6   : > { %p1604_p3 = pnand %p1607_p2, %p1995_p8 }
 0x2c8   : > { %1903 = dma.done.wait (!%p1604_p3), %s1284_s6, 8192  }
 0x2c9   : > { %1905 = vsyncadd (!%p1604_p3), %s1284_s6, 4294959104  ;;  %s15_s14 = sadd.s32 1, %s1928_s14   ;;  %s2938_s9 = smov %s1912_s10 }
 0x2ca   : > { %p12_p5 = scmp.ge.s32.totalorder %s15_s14, 4   ;;  %s2939_s10 = smov %s1916_s11 }
 0x2cb   : > { %s2940_s11 = smov %s2001_s22  ;;  %s2941_s12 = smov %s1924_s13 }
 0x2cc   : > { %s2942_s13 = smov %s2944_s17  ;;  %14 = sbr.rel (!%p12_p5) target bundleno = 4 (0x4), region = 66 }
 0x2d3   :  { %1289 = vsyncpa [#allocation3], 1 }
 0x2d4   :  { %1291 = vsyncpa [#allocation3 + $0x1], 1 }

</bundles_post_ra>
